<compile_context>
chip_gen: v6e
topology: v6e:2x2x1
jax: 0.10.0
libtpu: 0.0.40
codegen_flags: <defaults>
</compile_context>

<pallas_src>
import functools

import jax
import jax.numpy as jnp
import numpy as np
from jax.experimental import pallas as pl
from jax.experimental.pallas import tpu as pltpu

_PAD = 128                 # lane-padded feature width for every layer
_LAYER_ROWS = _PAD + 8     # 128 weight rows + 8 rows (bias lives in row 0)


def _mlp_chain(x, slab_ref, layer_ids):
    """Apply (Linear, ReLU)*N, Linear using layers packed in the param slab."""
    n = len(layer_ids)
    for idx, layer in enumerate(layer_ids):
        base = layer * _LAYER_ROWS
        w = slab_ref[base:base + _PAD, :]                 # [128, 128]
        b = slab_ref[base + _PAD:base + _PAD + 1, :]      # [1, 128]
        x = jnp.dot(x, w, preferred_element_type=jnp.float32) + b
        if idx < n - 1:                                   # no ReLU after final Linear
            x = jnp.maximum(x, 0.0)
    return x


def _cross_species_kernel(enc_a_layers, enc_b_layers, dec_layers,
                          a_ref, b_ref, slab_ref, out_ref):
    x_a = a_ref[...]                                      # already f32
    x_b = b_ref[...]
    encoded_a = _mlp_chain(x_a, slab_ref, enc_a_layers)
    encoded_b = _mlp_chain(x_b, slab_ref, enc_b_layers)
    decoded = _mlp_chain(encoded_a - encoded_b, dec_layers and dec_layers, slab_ref=None) \
        if False else _mlp_chain(encoded_a - encoded_b, slab_ref, dec_layers)
    out_ref[...] = decoded.astype(out_ref.dtype)


def _make_params(key, dims):
    """Deterministic PyTorch-Linear-style init; returns flat [W0, b0, W1, b1, ...]."""
    params = []
    for din, dout in zip(dims[:-1], dims[1:]):
        key, kw, kb = jax.random.split(key, 3)
        bound = 1.0 / np.sqrt(din)
        w = jax.random.uniform(kw, (din, dout), jnp.float32, -bound, bound)
        b = jax.random.uniform(kb, (1, dout), jnp.float32, -bound, bound)
        params += [w, b]
    return key, params


def _pack_param_slab(param_list):
    """Pack [W0,b0,W1,b1,...] into one [n_layers*_LAYER_ROWS, 128] f32 slab.

    Weights/biases are zero-padded to 128 on both axes -> numerically exact.
    """
    blocks = []
    for i in range(len(param_list) // 2):
        w = jnp.asarray(param_list[2 * i], jnp.float32)
        b = jnp.asarray(param_list[2 * i + 1], jnp.float32).reshape(1, -1)
        din, dout = w.shape
        w_pad = jnp.zeros((_PAD, _PAD), jnp.float32).at[:din, :dout].set(w)
        b_pad = jnp.zeros((8, _PAD), jnp.float32).at[0:1, :dout].set(b)
        blocks.append(jnp.concatenate([w_pad, b_pad], axis=0))
    return jnp.concatenate(blocks, axis=0)


def _pad_lanes(x):
    """Zero-pad the last (feature) axis up to 128 lanes."""
    b, d = x.shape
    if d == _PAD:
        return jnp.asarray(x, jnp.float32)
    return jnp.zeros((b, _PAD), jnp.float32).at[:, :d].set(x)


def _pick_batch_tile(batch):
    """Large tiles to amortize per-step overhead, but keep >=2 grid steps
    (v7x megacore) when the batch allows it; cap at 1024 rows per tile."""
    half = batch // 2
    if batch % 2 == 0 and half % 8 == 0 and half <= 1024:
        return half
    if batch <= 1024:
        return batch
    for tile in range(1024, 7, -8):
        if batch % tile == 0:
            return tile
    return batch  # fallback: single step


def cross_species_transcriptomics(input_a, input_b, enc_a_params, enc_b_params,
                                  dec_params, *, batch_tile=None):
    batch, _ = input_a.shape
    out_dim = dec_params[-2].shape[1]

    if batch_tile is None:
        batch_tile = _pick_batch_tile(batch)
    assert batch % batch_tile == 0

    n_enc_a = len(enc_a_params) // 2
    n_enc_b = len(enc_b_params) // 2
    n_dec = len(dec_params) // 2

    # Layer indices into the packed slab (encoder_A, encoder_B, decoder).
    enc_a_layers = tuple(range(0, n_enc_a))
    enc_b_layers = tuple(range(n_enc_a, n_enc_a + n_enc_b))
    dec_layers = tuple(range(n_enc_a + n_enc_b, n_enc_a + n_enc_b + n_dec))

    slab = _pack_param_slab(list(enc_a_params) + list(enc_b_params) + list(dec_params))
    a_pad = _pad_lanes(jnp.asarray(input_a, jnp.float32))
    b_pad = _pad_lanes(jnp.asarray(input_b, jnp.float32))

    kernel = functools.partial(
        _cross_species_kernel, enc_a_layers, enc_b_layers, dec_layers)

    out_padded = pl.pallas_call(
        kernel,
        out_shape=jax.ShapeDtypeStruct((batch, _PAD), jnp.float32),
        grid=(batch // batch_tile,),
        in_specs=[
            pl.BlockSpec((batch_tile, _PAD), lambda i: (i, 0)),
            pl.BlockSpec((batch_tile, _PAD), lambda i: (i, 0)),
            # one full, un-tiled parameter slab; constant index_map -> fetched once
            pl.BlockSpec(slab.shape, lambda i: (0, 0)),
        ],
        out_specs=pl.BlockSpec((batch_tile, _PAD), lambda i: (i, 0)),
        compiler_params=pltpu.CompilerParams(
            dimension_semantics=("parallel",)),
    )(a_pad, b_pad, slab)

    return out_padded[:, :out_dim]


def _reference(input_a, input_b, enc_a_params, enc_b_params, dec_params):
    def mlp(x, params):
        n = len(params) // 2
        for i in range(n):
            x = x @ params[2 * i] + params[2 * i + 1]
            if i < n - 1:
                x = jnp.maximum(x, 0.0)
        return x
    return mlp(mlp(input_a, enc_a_params) - mlp(input_b, enc_b_params), dec_params)


if __name__ == "__main__":
    # Small shapes consistent with the module's forward.
    batch = 16
    input_dim_A = 16
    input_dim_B = 12
    hidden_dim = 64  # must be divisible by 16

    key = jax.random.PRNGKey(0)
    key, ka, kb = jax.random.split(key, 3)
    input_a = jax.random.normal(ka, (batch, input_dim_A), jnp.float32)
    input_b = jax.random.normal(kb, (batch, input_dim_B), jnp.float32)

    h = hidden_dim
    enc_a_dims = [input_dim_A, h, h // 2, h // 4, h // 8, h // 16]
    enc_b_dims = [input_dim_B, h, h // 2, h // 4, h // 8, h // 16]
    dec_dims = [h // 16, h // 8, h // 4, h // 2, h, input_dim_B]

    key, enc_a_params = _make_params(key, enc_a_dims)
    key, enc_b_params = _make_params(key, enc_b_dims)
    key, dec_params = _make_params(key, dec_dims)

    out = cross_species_transcriptomics(
        input_a, input_b, enc_a_params, enc_b_params, dec_params)
    out = jax.block_until_ready(out)

    ref = _reference(input_a, input_b, enc_a_params, enc_b_params, dec_params)
    if not np.allclose(np.asarray(out), np.asarray(ref), atol=1e-4, rtol=1e-4):
        raise AssertionError("Pallas kernel output mismatch vs JAX reference")

    print("KERNEL_OK")
</pallas_src>

<mosaic_0001>
module attributes {stable_mosaic.version = 11 : i64} {
  func.func @_cross_species_kernel(%arg0: i32, %arg1: memref<8x128xf32, #tpu.memory_space<vmem>>, %arg2: memref<8x128xf32, #tpu.memory_space<vmem>>, %arg3: memref<2040x128xf32, #tpu.memory_space<vmem>>, %arg4: memref<8x128xf32, #tpu.memory_space<vmem>>) attributes {dimension_semantics = [#tpu.dimension_semantics<parallel>], iteration_bounds = array<i64: 2>, scalar_prefetch = 0 : i64, scratch_operands = 0 : i64, tpu.core_type = #tpu.core_type<tc>, window_params = [{transform_indices = @transform_0, window_bounds = array<i64: 8, 128>}, {transform_indices = @transform_1, window_bounds = array<i64: 8, 128>}, {pipeline_mode = #tpu.pipeline_mode<synchronous>, transform_indices = @transform_2, window_bounds = array<i64: 2040, 128>}, {transform_indices = @transform_3, window_bounds = array<i64: 8, 128>}]} {
    %c0 = arith.constant 0 : index
    %c0_0 = arith.constant 0 : index
    %0 = vector.load %arg1[%c0, %c0_0] : memref<8x128xf32, #tpu.memory_space<vmem>>, vector<8x128xf32>
    %c0_1 = arith.constant 0 : index
    %c0_2 = arith.constant 0 : index
    %1 = vector.load %arg2[%c0_1, %c0_2] : memref<8x128xf32, #tpu.memory_space<vmem>>, vector<8x128xf32>
    %c0_3 = arith.constant 0 : index
    %c0_4 = arith.constant 0 : index
    %2 = vector.load %arg3[%c0_3, %c0_4] : memref<2040x128xf32, #tpu.memory_space<vmem>>, vector<128x128xf32>
    %c128 = arith.constant 128 : index
    %c0_5 = arith.constant 0 : index
    %3 = vector.load %arg3[%c128, %c0_5] : memref<2040x128xf32, #tpu.memory_space<vmem>>, vector<1x128xf32>
    %cst = arith.constant dense<0.000000e+00> : vector<8x128xf32>
    %4 = tpu.matmul %0, %2, %cst {dimension_numbers = #tpu.dot_dimension_numbers<[1], [0], [0], [1], [0, 0, 1, 1], [], []>} : vector<8x128xf32>, vector<128x128xf32>, vector<8x128xf32> -> vector<8x128xf32>
    %5 = vector.broadcast %3 : vector<1x128xf32> to vector<8x128xf32>
    %6 = arith.addf %4, %5 : vector<8x128xf32>
    %cst_6 = arith.constant 0.000000e+00 : f32
    %7 = vector.broadcast %cst_6 : f32 to vector<8x128xf32>
    %8 = arith.maximumf %6, %7 : vector<8x128xf32>
    %c136 = arith.constant 136 : index
    %c0_7 = arith.constant 0 : index
    %9 = vector.load %arg3[%c136, %c0_7] : memref<2040x128xf32, #tpu.memory_space<vmem>>, vector<128x128xf32>
    %c264 = arith.constant 264 : index
    %c0_8 = arith.constant 0 : index
    %10 = vector.load %arg3[%c264, %c0_8] : memref<2040x128xf32, #tpu.memory_space<vmem>>, vector<1x128xf32>
    %cst_9 = arith.constant dense<0.000000e+00> : vector<8x128xf32>
    %11 = tpu.matmul %8, %9, %cst_9 {dimension_numbers = #tpu.dot_dimension_numbers<[1], [0], [0], [1], [0, 0, 1, 1], [], []>} : vector<8x128xf32>, vector<128x128xf32>, vector<8x128xf32> -> vector<8x128xf32>
    %12 = vector.broadcast %10 : vector<1x128xf32> to vector<8x128xf32>
    %13 = arith.addf %11, %12 : vector<8x128xf32>
    %cst_10 = arith.constant 0.000000e+00 : f32
    %14 = vector.broadcast %cst_10 : f32 to vector<8x128xf32>
    %15 = arith.maximumf %13, %14 : vector<8x128xf32>
    %c272 = arith.constant 272 : index
    %c0_11 = arith.constant 0 : index
    %16 = vector.load %arg3[%c272, %c0_11] : memref<2040x128xf32, #tpu.memory_space<vmem>>, vector<128x128xf32>
    %c400 = arith.constant 400 : index
    %c0_12 = arith.constant 0 : index
    %17 = vector.load %arg3[%c400, %c0_12] : memref<2040x128xf32, #tpu.memory_space<vmem>>, vector<1x128xf32>
    %cst_13 = arith.constant dense<0.000000e+00> : vector<8x128xf32>
    %18 = tpu.matmul %15, %16, %cst_13 {dimension_numbers = #tpu.dot_dimension_numbers<[1], [0], [0], [1], [0, 0, 1, 1], [], []>} : vector<8x128xf32>, vector<128x128xf32>, vector<8x128xf32> -> vector<8x128xf32>
    %19 = vector.broadcast %17 : vector<1x128xf32> to vector<8x128xf32>
    %20 = arith.addf %18, %19 : vector<8x128xf32>
    %cst_14 = arith.constant 0.000000e+00 : f32
    %21 = vector.broadcast %cst_14 : f32 to vector<8x128xf32>
    %22 = arith.maximumf %20, %21 : vector<8x128xf32>
    %c408 = arith.constant 408 : index
    %c0_15 = arith.constant 0 : index
    %23 = vector.load %arg3[%c408, %c0_15] : memref<2040x128xf32, #tpu.memory_space<vmem>>, vector<128x128xf32>
    %c536 = arith.constant 536 : index
    %c0_16 = arith.constant 0 : index
    %24 = vector.load %arg3[%c536, %c0_16] : memref<2040x128xf32, #tpu.memory_space<vmem>>, vector<1x128xf32>
    %cst_17 = arith.constant dense<0.000000e+00> : vector<8x128xf32>
    %25 = tpu.matmul %22, %23, %cst_17 {dimension_numbers = #tpu.dot_dimension_numbers<[1], [0], [0], [1], [0, 0, 1, 1], [], []>} : vector<8x128xf32>, vector<128x128xf32>, vector<8x128xf32> -> vector<8x128xf32>
    %26 = vector.broadcast %24 : vector<1x128xf32> to vector<8x128xf32>
    %27 = arith.addf %25, %26 : vector<8x128xf32>
    %cst_18 = arith.constant 0.000000e+00 : f32
    %28 = vector.broadcast %cst_18 : f32 to vector<8x128xf32>
    %29 = arith.maximumf %27, %28 : vector<8x128xf32>
    %c544 = arith.constant 544 : index
    %c0_19 = arith.constant 0 : index
    %30 = vector.load %arg3[%c544, %c0_19] : memref<2040x128xf32, #tpu.memory_space<vmem>>, vector<128x128xf32>
    %c672 = arith.constant 672 : index
    %c0_20 = arith.constant 0 : index
    %31 = vector.load %arg3[%c672, %c0_20] : memref<2040x128xf32, #tpu.memory_space<vmem>>, vector<1x128xf32>
    %cst_21 = arith.constant dense<0.000000e+00> : vector<8x128xf32>
    %32 = tpu.matmul %29, %30, %cst_21 {dimension_numbers = #tpu.dot_dimension_numbers<[1], [0], [0], [1], [0, 0, 1, 1], [], []>} : vector<8x128xf32>, vector<128x128xf32>, vector<8x128xf32> -> vector<8x128xf32>
    %33 = vector.broadcast %31 : vector<1x128xf32> to vector<8x128xf32>
    %34 = arith.addf %32, %33 : vector<8x128xf32>
    %c680 = arith.constant 680 : index
    %c0_22 = arith.constant 0 : index
    %35 = vector.load %arg3[%c680, %c0_22] : memref<2040x128xf32, #tpu.memory_space<vmem>>, vector<128x128xf32>
    %c808 = arith.constant 808 : index
    %c0_23 = arith.constant 0 : index
    %36 = vector.load %arg3[%c808, %c0_23] : memref<2040x128xf32, #tpu.memory_space<vmem>>, vector<1x128xf32>
    %cst_24 = arith.constant dense<0.000000e+00> : vector<8x128xf32>
    %37 = tpu.matmul %1, %35, %cst_24 {dimension_numbers = #tpu.dot_dimension_numbers<[1], [0], [0], [1], [0, 0, 1, 1], [], []>} : vector<8x128xf32>, vector<128x128xf32>, vector<8x128xf32> -> vector<8x128xf32>
    %38 = vector.broadcast %36 : vector<1x128xf32> to vector<8x128xf32>
    %39 = arith.addf %37, %38 : vector<8x128xf32>
    %cst_25 = arith.constant 0.000000e+00 : f32
    %40 = vector.broadcast %cst_25 : f32 to vector<8x128xf32>
    %41 = arith.maximumf %39, %40 : vector<8x128xf32>
    %c816 = arith.constant 816 : index
    %c0_26 = arith.constant 0 : index
    %42 = vector.load %arg3[%c816, %c0_26] : memref<2040x128xf32, #tpu.memory_space<vmem>>, vector<128x128xf32>
    %c944 = arith.constant 944 : index
    %c0_27 = arith.constant 0 : index
    %43 = vector.load %arg3[%c944, %c0_27] : memref<2040x128xf32, #tpu.memory_space<vmem>>, vector<1x128xf32>
    %cst_28 = arith.constant dense<0.000000e+00> : vector<8x128xf32>
    %44 = tpu.matmul %41, %42, %cst_28 {dimension_numbers = #tpu.dot_dimension_numbers<[1], [0], [0], [1], [0, 0, 1, 1], [], []>} : vector<8x128xf32>, vector<128x128xf32>, vector<8x128xf32> -> vector<8x128xf32>
    %45 = vector.broadcast %43 : vector<1x128xf32> to vector<8x128xf32>
    %46 = arith.addf %44, %45 : vector<8x128xf32>
    %cst_29 = arith.constant 0.000000e+00 : f32
    %47 = vector.broadcast %cst_29 : f32 to vector<8x128xf32>
    %48 = arith.maximumf %46, %47 : vector<8x128xf32>
    %c952 = arith.constant 952 : index
    %c0_30 = arith.constant 0 : index
    %49 = vector.load %arg3[%c952, %c0_30] : memref<2040x128xf32, #tpu.memory_space<vmem>>, vector<128x128xf32>
    %c1080 = arith.constant 1080 : index
    %c0_31 = arith.constant 0 : index
    %50 = vector.load %arg3[%c1080, %c0_31] : memref<2040x128xf32, #tpu.memory_space<vmem>>, vector<1x128xf32>
    %cst_32 = arith.constant dense<0.000000e+00> : vector<8x128xf32>
    %51 = tpu.matmul %48, %49, %cst_32 {dimension_numbers = #tpu.dot_dimension_numbers<[1], [0], [0], [1], [0, 0, 1, 1], [], []>} : vector<8x128xf32>, vector<128x128xf32>, vector<8x128xf32> -> vector<8x128xf32>
    %52 = vector.broadcast %50 : vector<1x128xf32> to vector<8x128xf32>
    %53 = arith.addf %51, %52 : vector<8x128xf32>
    %cst_33 = arith.constant 0.000000e+00 : f32
    %54 = vector.broadcast %cst_33 : f32 to vector<8x128xf32>
    %55 = arith.maximumf %53, %54 : vector<8x128xf32>
    %c1088 = arith.constant 1088 : index
    %c0_34 = arith.constant 0 : index
    %56 = vector.load %arg3[%c1088, %c0_34] : memref<2040x128xf32, #tpu.memory_space<vmem>>, vector<128x128xf32>
    %c1216 = arith.constant 1216 : index
    %c0_35 = arith.constant 0 : index
    %57 = vector.load %arg3[%c1216, %c0_35] : memref<2040x128xf32, #tpu.memory_space<vmem>>, vector<1x128xf32>
    %cst_36 = arith.constant dense<0.000000e+00> : vector<8x128xf32>
    %58 = tpu.matmul %55, %56, %cst_36 {dimension_numbers = #tpu.dot_dimension_numbers<[1], [0], [0], [1], [0, 0, 1, 1], [], []>} : vector<8x128xf32>, vector<128x128xf32>, vector<8x128xf32> -> vector<8x128xf32>
    %59 = vector.broadcast %57 : vector<1x128xf32> to vector<8x128xf32>
    %60 = arith.addf %58, %59 : vector<8x128xf32>
    %cst_37 = arith.constant 0.000000e+00 : f32
    %61 = vector.broadcast %cst_37 : f32 to vector<8x128xf32>
    %62 = arith.maximumf %60, %61 : vector<8x128xf32>
    %c1224 = arith.constant 1224 : index
    %c0_38 = arith.constant 0 : index
    %63 = vector.load %arg3[%c1224, %c0_38] : memref<2040x128xf32, #tpu.memory_space<vmem>>, vector<128x128xf32>
    %c1352 = arith.constant 1352 : index
    %c0_39 = arith.constant 0 : index
    %64 = vector.load %arg3[%c1352, %c0_39] : memref<2040x128xf32, #tpu.memory_space<vmem>>, vector<1x128xf32>
    %cst_40 = arith.constant dense<0.000000e+00> : vector<8x128xf32>
    %65 = tpu.matmul %62, %63, %cst_40 {dimension_numbers = #tpu.dot_dimension_numbers<[1], [0], [0], [1], [0, 0, 1, 1], [], []>} : vector<8x128xf32>, vector<128x128xf32>, vector<8x128xf32> -> vector<8x128xf32>
    %66 = vector.broadcast %64 : vector<1x128xf32> to vector<8x128xf32>
    %67 = arith.addf %65, %66 : vector<8x128xf32>
    %68 = arith.subf %34, %67 : vector<8x128xf32>
    %c1360 = arith.constant 1360 : index
    %c0_41 = arith.constant 0 : index
    %69 = vector.load %arg3[%c1360, %c0_41] : memref<2040x128xf32, #tpu.memory_space<vmem>>, vector<128x128xf32>
    %c1488 = arith.constant 1488 : index
    %c0_42 = arith.constant 0 : index
    %70 = vector.load %arg3[%c1488, %c0_42] : memref<2040x128xf32, #tpu.memory_space<vmem>>, vector<1x128xf32>
    %cst_43 = arith.constant dense<0.000000e+00> : vector<8x128xf32>
    %71 = tpu.matmul %68, %69, %cst_43 {dimension_numbers = #tpu.dot_dimension_numbers<[1], [0], [0], [1], [0, 0, 1, 1], [], []>} : vector<8x128xf32>, vector<128x128xf32>, vector<8x128xf32> -> vector<8x128xf32>
    %72 = vector.broadcast %70 : vector<1x128xf32> to vector<8x128xf32>
    %73 = arith.addf %71, %72 : vector<8x128xf32>
    %cst_44 = arith.constant 0.000000e+00 : f32
    %74 = vector.broadcast %cst_44 : f32 to vector<8x128xf32>
    %75 = arith.maximumf %73, %74 : vector<8x128xf32>
    %c1496 = arith.constant 1496 : index
    %c0_45 = arith.constant 0 : index
    %76 = vector.load %arg3[%c1496, %c0_45] : memref<2040x128xf32, #tpu.memory_space<vmem>>, vector<128x128xf32>
    %c1624 = arith.constant 1624 : index
    %c0_46 = arith.constant 0 : index
    %77 = vector.load %arg3[%c1624, %c0_46] : memref<2040x128xf32, #tpu.memory_space<vmem>>, vector<1x128xf32>
    %cst_47 = arith.constant dense<0.000000e+00> : vector<8x128xf32>
    %78 = tpu.matmul %75, %76, %cst_47 {dimension_numbers = #tpu.dot_dimension_numbers<[1], [0], [0], [1], [0, 0, 1, 1], [], []>} : vector<8x128xf32>, vector<128x128xf32>, vector<8x128xf32> -> vector<8x128xf32>
    %79 = vector.broadcast %77 : vector<1x128xf32> to vector<8x128xf32>
    %80 = arith.addf %78, %79 : vector<8x128xf32>
    %cst_48 = arith.constant 0.000000e+00 : f32
    %81 = vector.broadcast %cst_48 : f32 to vector<8x128xf32>
    %82 = arith.maximumf %80, %81 : vector<8x128xf32>
    %c1632 = arith.constant 1632 : index
    %c0_49 = arith.constant 0 : index
    %83 = vector.load %arg3[%c1632, %c0_49] : memref<2040x128xf32, #tpu.memory_space<vmem>>, vector<128x128xf32>
    %c1760 = arith.constant 1760 : index
    %c0_50 = arith.constant 0 : index
    %84 = vector.load %arg3[%c1760, %c0_50] : memref<2040x128xf32, #tpu.memory_space<vmem>>, vector<1x128xf32>
    %cst_51 = arith.constant dense<0.000000e+00> : vector<8x128xf32>
    %85 = tpu.matmul %82, %83, %cst_51 {dimension_numbers = #tpu.dot_dimension_numbers<[1], [0], [0], [1], [0, 0, 1, 1], [], []>} : vector<8x128xf32>, vector<128x128xf32>, vector<8x128xf32> -> vector<8x128xf32>
    %86 = vector.broadcast %84 : vector<1x128xf32> to vector<8x128xf32>
    %87 = arith.addf %85, %86 : vector<8x128xf32>
    %cst_52 = arith.constant 0.000000e+00 : f32
    %88 = vector.broadcast %cst_52 : f32 to vector<8x128xf32>
    %89 = arith.maximumf %87, %88 : vector<8x128xf32>
    %c1768 = arith.constant 1768 : index
    %c0_53 = arith.constant 0 : index
    %90 = vector.load %arg3[%c1768, %c0_53] : memref<2040x128xf32, #tpu.memory_space<vmem>>, vector<128x128xf32>
    %c1896 = arith.constant 1896 : index
    %c0_54 = arith.constant 0 : index
    %91 = vector.load %arg3[%c1896, %c0_54] : memref<2040x128xf32, #tpu.memory_space<vmem>>, vector<1x128xf32>
    %cst_55 = arith.constant dense<0.000000e+00> : vector<8x128xf32>
    %92 = tpu.matmul %89, %90, %cst_55 {dimension_numbers = #tpu.dot_dimension_numbers<[1], [0], [0], [1], [0, 0, 1, 1], [], []>} : vector<8x128xf32>, vector<128x128xf32>, vector<8x128xf32> -> vector<8x128xf32>
    %93 = vector.broadcast %91 : vector<1x128xf32> to vector<8x128xf32>
    %94 = arith.addf %92, %93 : vector<8x128xf32>
    %cst_56 = arith.constant 0.000000e+00 : f32
    %95 = vector.broadcast %cst_56 : f32 to vector<8x128xf32>
    %96 = arith.maximumf %94, %95 : vector<8x128xf32>
    %c1904 = arith.constant 1904 : index
    %c0_57 = arith.constant 0 : index
    %97 = vector.load %arg3[%c1904, %c0_57] : memref<2040x128xf32, #tpu.memory_space<vmem>>, vector<128x128xf32>
    %c2032 = arith.constant 2032 : index
    %c0_58 = arith.constant 0 : index
    %98 = vector.load %arg3[%c2032, %c0_58] : memref<2040x128xf32, #tpu.memory_space<vmem>>, vector<1x128xf32>
    %cst_59 = arith.constant dense<0.000000e+00> : vector<8x128xf32>
    %99 = tpu.matmul %96, %97, %cst_59 {dimension_numbers = #tpu.dot_dimension_numbers<[1], [0], [0], [1], [0, 0, 1, 1], [], []>} : vector<8x128xf32>, vector<128x128xf32>, vector<8x128xf32> -> vector<8x128xf32>
    %100 = vector.broadcast %98 : vector<1x128xf32> to vector<8x128xf32>
    %101 = arith.addf %99, %100 : vector<8x128xf32>
    %c0_60 = arith.constant 0 : index
    %c0_61 = arith.constant 0 : index
    %102 = vector.load %arg4[%c0_60, %c0_61] : memref<8x128xf32, #tpu.memory_space<vmem>>, vector<8x128xf32>
    tpu.vector_store %arg4[%c0_60, %c0_61], %101 {strides = array<i32>} : memref<8x128xf32, #tpu.memory_space<vmem>>, vector<8x128xf32>,
    return
  }
  func.func @transform_0(%arg0: i32) -> (i32, i32) {
    %c0_i32 = arith.constant 0 : i32
    %c0_i32_0 = arith.constant 0 : i32
    return %arg0, %c0_i32 : i32, i32
  }
  func.func @transform_1(%arg0: i32) -> (i32, i32) {
    %c0_i32 = arith.constant 0 : i32
    %c0_i32_0 = arith.constant 0 : i32
    return %arg0, %c0_i32 : i32, i32
  }
  func.func @transform_2(%arg0: i32) -> (i32, i32) {
    %c0_i32 = arith.constant 0 : i32
    %c0_i32_0 = arith.constant 0 : i32
    %c0_i32_1 = arith.constant 0 : i32
    return %c0_i32, %c0_i32_0 : i32, i32
  }
  func.func @transform_3(%arg0: i32) -> (i32, i32) {
    %c0_i32 = arith.constant 0 : i32
    %c0_i32_0 = arith.constant 0 : i32
    return %arg0, %c0_i32 : i32, i32
  }
}

</mosaic_0001>

<bundles_post_ra>
// kernel: tpu_custom_call.1
= control target key start
LH: loop header
LB: loop body
LE: loop exit
PB: predicated region body
PF: predicated region fallthrough
CT: control target
= control target key end

     0   :  { %8 = vsyncpa [#allocation3], 0  ;;  %s3277_s0 = inlined_call_operand.hbm [shape: f32[16,128], index: 0, kind: input, shape index: {}]   ;;  %s3278_s1 = inlined_call_operand.hbm [shape: f32[16,128], index: 1, kind: input, shape index: {}]   ;;  %s3279_s2 = inlined_call_operand.hbm [shape: f32[2040,128], index: 2, kind: input, shape index: {}]   ;;  %s3280_s3 = inlined_call_operand.hbm [shape: f32[16,128], index: 3, kind: output, shape index: {}]  }
   0x1   :  { %10 = vsyncpa [#allocation3 + $0x1], 0 }
   0x2   :  { %11 = vsyncpa [#allocation6], 0 }
   0x3   :  { %13 = vsyncpa [#allocation6 + $0x1], 0 }
   0x4   :  { %14 = vsyncpa [#allocation4], 0 }
   0x5   :  { %16 = vsyncpa [#allocation4 + $0x1], 0  ;;  %s2796_s12 = smov 0   ;;  %s2798_s13 = smov 0  }
   0x6   :  { %s2800_s14 = smov 0   ;;  %s2802_s15 = smov 0  }
   0x7 LB: > { %s2817_s16 = sadd.s32 4294967295, %s2766_s15   ;;  %s1734_s17 = sadd.s32 4294967294, %s2766_s15   ;;  %s2766_s15 = sphi %s2802_s15, %s3302_s15   ;;  %s2762_s14 = sphi %s2800_s14, %s3301_s14   ;;  %s2758_s13 = sphi %s2798_s13, %s3300_s13   ;;  %s2754_s12 = sphi %s2796_s12, %s3299_s12  }
   0x8   : > { %p42_p0 = scmp.ne.s32.totalorder %s2758_s13, %s2754_s12  ;;  %p3281_p1 = scmp.eq.s32.totalorder %s2817_s16, 0 }
   0x9   : > { %p119_p3 = scmp.eq.s32.totalorder %s1734_s17, 1  ;;  %p1735_p5 = scmp.ge.s32.totalorder %s2766_s15, 1 }
   0xa   : > { %p2826_p4 = por %p3281_p1, %p42_p0  ;;  %p126_p7 = scmp.lt.s32.totalorder %s2766_s15, 3 }
   0xb   : > { %p2831_p6 = por %p119_p3, %p42_p0  ;;  %s2768_s21 = smov [#allocation7]  }
   0xc   : > { %s3285_s18 = scalar_select %p2826_p4, 1, 0 }
   0xd   : > { %s3286_s19 = scalar_select %p2831_p6, 1, 0 }
   0xe   : > { %p2836_p8 = pnand %p1735_p5, %p126_p7  ;;  %s138_s22 = sshll.u32 %s2768_s21, 4  ;;  %s139_s22 = int_to_ptr.vmem [resolvable:$true] %s138_s22 }
   0xf   : > { %s2850_s24 = sadd.s32 1, %s2766_s15   ;;  %s29_s25 = sadd.s32 1, %s2762_s14 }
  0x10   : > { %s3287_s20 = scalar_select %p2836_p8, 1, 0 }
  0x11   : > { %p2556_p9 = pneg %p2836_p8  ;;  %s26_s26 = ssub.s32 %s2766_s15, %s2850_s24 }
  0x12   : > { %s2623_s27 = scalar_lea.vmem %s139_s22, 32640  ;;  %p2631_p5 = scmp.lt.s32.totalorder %s139_s22, %s139_s22 }
  0x13   : > { %p2845_p11 = pnand %p2556_p9, %p3281_p1  ;;  %p2624_p13 = scmp.ne.s32.totalorder %s139_s22, %s2623_s27 }
  0x14   : > { %p2632_p7 = scmp.lt.s32.totalorder %s2623_s27, %s2623_s27 }
  0x15   : > { %p2614_p12 = pneg %p2845_p11 }
  0x16   : > { %p2633_p10 = por %p2632_p7, %p2631_p5 }
  0x17   : > { %p2626_p0 = pnand %p2624_p13, %p2614_p12 }
  0x19   : > { %p2627_p3 = pneg %p2626_p0 }
  0x1b   : > { %p2634_p2 = pnand %p2633_p10, %p2627_p3 }
  0x1d   : > { %2637 = shalt.err (!%p2634_p2)
}
  0x1e   : > { %s2769_s28 = smov 128   ;;  %s2770_s29 = smov 8  }
  0x1f   : > { %2559 = dma.hbm_to_vmem [thread:$0]  (!%p2845_p11), %s3279_s2, 32640, %s139_s22, [#allocation6], %s2769_s28, %s2769_s28, %s2770_s29  }
  0x20   : > { %p27_p9 = scmp.eq.s32.totalorder %s26_s26, 0  ;;  %p36_p12 = scmp.ne.s32.totalorder %s2762_s14, %s2758_s13 }
  0x21   : > { %p37_p10 = scmp.eq.s32.totalorder %s2766_s15, 0  ;;  %p2572_p2 = scmp.lt.s32.totalorder %s2766_s15, 2 }
  0x22   : > { %s2867_s5 = scalar_select %p27_p9, %s2762_s14, %s29_s25  }
  0x23   : > { %p38_p13 = por %p37_p10, %p36_p12  ;;  %p3289_p0 = scmp.eq.s32.totalorder %s2817_s16, 1 }
  0x24   : > { %s152_s7 = sand.u32 1, %s2762_s14   ;;  %s1739_s8 = sshll.u32 %s2766_s15, 7 }
  0x25   : > { %p2871_p3 = por %p3289_p0, %p36_p12  ;;  %s2877_s9 = sshll.u32 %s152_s7, 3 }
  0x26   : > { %s2882_s17 = scalar_lea.hbm %s3277_s0, %s1739_s8  ;;  %s156_s21 = scalar_lea.vmem [#allocation2], %s2877_s9 }
  0x27   : > { %s3290_s6 = scalar_select %p2871_p3, 1, 0 }
  0x28   : > { %s163_s22 = sshll.u32 %s156_s21, 4  ;;  %p2885_p11 = pnand %p2572_p2, %p38_p13  ;;  %s164_s22 = int_to_ptr.vmem [resolvable:$true] %s163_s22 }
  0x29   : > { %s2892_s27 = scalar_lea.hbm %s3278_s1, %s1739_s8  ;;  %s153_s28 = scalar_lea.sflag [#allocation3], %s152_s7 }
  0x2a   : > { %s2638_s29 = scalar_lea.hbm %s2882_s17, 128  ;;  %p2640_p7 = pneg %p2885_p11 }
  0x2b   : > { %p2639_p5 = scmp.ne.s32.totalorder %s2882_s17, %s2638_s29  ;;  %s2643_s10 = scalar_lea.hbm %s3277_s0, 256 }
  0x2c   : > { %p2644_p10 = scmp.lt.s32.totalorder %s2882_s17, %s3277_s0  ;;  %p2645_p2 = scmp.lt.s32.totalorder %s2643_s10, %s2638_s29 }
  0x2d   : > { %p2641_p9 = pnand %p2640_p7, %p2639_p5 }
  0x2e   : > { %p2646_p13 = por %p2645_p2, %p2644_p10 }
  0x2f   : > { %p2642_p12 = pneg %p2641_p9 }
  0x31   : > { %p2647_p0 = pnand %p2646_p13, %p2642_p12 }
  0x33   : > { %2650 = shalt.err (!%p2647_p0)
}
  0x34   : > { %s2651_s7 = scalar_lea.vmem %s164_s22, 128  ;;  %s2771_s8 = smov [#allocation2]  }
  0x35   : > { %p2652_p1 = scmp.ne.s32.totalorder %s164_s22, %s2651_s7  ;;  %s2656_s25 = sshll.u32 %s2771_s8, 4  ;;  %s2657_s25 = int_to_ptr.vmem [resolvable:$false] %s2656_s25 }
  0x36   : > { %s2658_s26 = scalar_lea.vmem %s2657_s25, 256  ;;  %p2659_p9 = scmp.lt.s32.totalorder %s164_s22, %s2657_s25 }
  0x37   : > { %p2654_p6 = pnand %p2652_p1, %p2640_p7  ;;  %p2660_p3 = scmp.lt.s32.totalorder %s2658_s26, %s2651_s7 }
  0x39   : > { %p2655_p5 = pneg %p2654_p6  ;;  %p2661_p4 = por %p2660_p3, %p2659_p9 }
  0x3b   : > { %p2662_p8 = pnand %p2661_p4, %p2655_p5 }
  0x3d   : > { %2665 = shalt.err (!%p2662_p8)
}
  0x3e   : > { %2563 = dma.hbm_to_vmem [thread:$0]  (!%p2885_p11), %s2882_s17, 128, %s164_s22, %s153_s28  }
  0x3f   : > { %s170_s29 = sand.u32 1, %s2766_s15   ;;  %s174_s30 = scalar_lea.vmem [#allocation5], %s2877_s9 }
  0x40   : > { %s181_s4 = sshll.u32 %s174_s30, 4  ;;  %s171_s10 = scalar_lea.sflag [#allocation6], %s170_s29  ;;  %s182_s4 = int_to_ptr.vmem [resolvable:$true] %s181_s4 }
  0x41   : > { %s2666_s11 = scalar_lea.hbm %s2892_s27, 128  ;;  %s2671_s8 = scalar_lea.hbm %s3278_s1, 256 }
  0x42   : > { %p2667_p1 = scmp.ne.s32.totalorder %s2892_s27, %s2666_s11  ;;  %p2672_p8 = scmp.lt.s32.totalorder %s2892_s27, %s3278_s1 }
  0x43   : > { %p2673_p3 = scmp.lt.s32.totalorder %s2671_s8, %s2666_s11 }
  0x44   : > { %p2669_p4 = pnand %p2667_p1, %p2640_p7 }
  0x45   : > { %p2674_p12 = por %p2673_p3, %p2672_p8 }
  0x46   : > { %p2670_p6 = pneg %p2669_p4 }
  0x48   : > { %p2675_p10 = pnand %p2674_p12, %p2670_p6 }
  0x4a   : > { %2678 = shalt.err (!%p2675_p10)
}
  0x4b   : > { %s2679_s9 = scalar_lea.vmem %s182_s4, 128  ;;  %s2772_s17 = smov [#allocation5]  }
  0x4c   : > { %p2680_p2 = scmp.ne.s32.totalorder %s182_s4, %s2679_s9  ;;  %s2684_s22 = sshll.u32 %s2772_s17, 4  ;;  %s2685_s22 = int_to_ptr.vmem [resolvable:$false] %s2684_s22 }
  0x4d   : > { %s2686_s28 = scalar_lea.vmem %s2685_s22, 256  ;;  %p2687_p5 = scmp.lt.s32.totalorder %s182_s4, %s2685_s22 }
  0x4e   : > { %p2682_p13 = pnand %p2680_p2, %p2640_p7  ;;  %p2688_p9 = scmp.lt.s32.totalorder %s2686_s28, %s2679_s9 }
  0x50   : > { %p2683_p0 = pneg %p2682_p13  ;;  %p2689_p1 = por %p2688_p9, %p2687_p5 }
  0x52   : > { %p2690_p4 = pnand %p2689_p1, %p2683_p0 }
  0x54   : > { %2693 = shalt.err (!%p2690_p4)
}
  0x55   : > { %2566 = dma.hbm_to_vmem [thread:$0]  (!%p2885_p11), %s2892_s27, 128, %s182_s4, %s171_s10  }
  0x56   : > { %p3292_p6 = scmp.ne.s32.totalorder %s3287_s20, 0 }
  0x57   : > { %s2937_s29 = sand.u32 (!%p3292_p6), 1, %s2758_s13   ;;  %p3293_p7 = scmp.ne.s32.totalorder (!%p3292_p6), %s3285_s18, 0 }
  0x58   : > { %190 = sbr.rel (%p3292_p6) target bundleno = 2738 (0xab2), region = 32  ;;  %s2940_s30 = sshll.u32 (!%p3292_p6), %s2937_s29, 3 }
  0x59   : > { %s193_s11 = scalar_lea.sflag (!%p3292_p6), [#allocation3], %s2937_s29  ;;  %s196_s21 = scalar_lea.vmem (!%p3292_p6), [#allocation2], %s2940_s30 }
  0x5d   : > { %2737 = dma.done.wait (%p3293_p7), %s193_s11, 128  }
  0x5e   : > { %2739 = vsyncadd (%p3293_p7), %s193_s11, 4294967168  ;;  %s201_s20 = sand.u32 1, %s2817_s16   ;;  %s205_s27 = scalar_lea.vmem [#allocation5], %s2940_s30 }
  0x5f   : > { %s202_s23 = scalar_lea.sflag [#allocation6], %s201_s20 }
  0x60   : > { %2741 = dma.done.wait (%p3293_p7), %s202_s23, 128  }
  0x61   : > { %2743 = vsyncadd (%p3293_p7), %s202_s23, 4294967168  ;;  %p3294_p11 = scmp.eq.s32.totalorder %s2817_s16, 0 }
  0x63   : > { %2745 = dma.done.wait (%p3294_p11), [#allocation6], 32640   ;;  %p3295_p8 = pmov %p3294_p11 }
  0x64   : > { %v2773_v0 = vmov 0.0   ;;  %vm2774_vm0 = vmmov 0   ;;  %v254_v1 = vld [vmem:[#allocation7 + $0x78] sm:$0xff]  ;;  %v253_v2 = vld [vmem:[#allocation7 + $0x70] sm:$0xff]  ;;  %v252_v3 = vld [vmem:[#allocation7 + $0x68] sm:$0xff]  ;;  %s1763_s18 = sshll.u32 %s2817_s16, 7 }
  0x65   : > { %2747 = vsyncadd (%p3295_p8), [#allocation6], 4294934656  ;;  %2021 = vmatprep.subr.mxu0 %v2773_v0  ;;  %2053 = vmatprep.mubr.msk.f32.mxu0 %vm2774_vm0, %v2773_v0  ;;  %v251_v4 = vld [vmem:[#allocation7 + $0x60] sm:$0xff]  ;;  %v250_v6 = vld [vmem:[#allocation7 + $0x58] sm:$0xff]  ;;  %s236_s4 = scalar_lea.vmem [#allocation8], %s2940_s30  ;;  %s3240_s25 = scalar_lea.hbm %s3280_s3, %s1763_s18 }
  0x66   : > { %2056 = vmatprep.subr.mxu1 %v2773_v0  ;;  %2088 = vmatprep.mubr.msk.f32.mxu1 %vm2774_vm0, %v2773_v0  ;;  %v346_v5 = vld [vmem:[#allocation7 + $0x100] sm:$0xff]  ;;  %v345_v7 = vld [vmem:[#allocation7 + $0xf8] sm:$0xff]  ;;  %v344_v8 = vld [vmem:[#allocation7 + $0xf0] sm:$0xff]  ;;  %s1632_s10 = sshll.u32 %s236_s4, 4  ;;  %s1619_s26 = scalar_lea.sflag [#allocation4], %s2937_s29  ;;  %s1633_s10 = int_to_ptr.vmem [resolvable:$true] %s1632_s10 }
  0x67   : > { %2022 = vmatpush3.msra.mxu0 %v254_v1  ;;  %2057 = vmatpush3.msra.mxu1 %v346_v5  ;;  %v249_v9 = vld [vmem:[#allocation7 + $0x50] sm:$0xff]  ;;  %v343_v10 = vld [vmem:[#allocation7 + $0xe8] sm:$0xff]  ;;  %v342_v12 = vld [vmem:[#allocation7 + $0xe0] sm:$0xff]  ;;  %s2694_s9 = scalar_lea.vmem %s1633_s10, 128  ;;  %p3296_p12 = scmp.ne.s32.totalorder %s3290_s6, 0 }
  0x68   : > { %2023 = vmatprep.subr.mxu0 %v2773_v0  ;;  %2058 = vmatprep.subr.mxu1 %v2773_v0  ;;  %v248_v11 = vld [vmem:[#allocation7 + $0x48] sm:$0xff]  ;;  %v247_v13 = vld [vmem:[#allocation7 + $0x40] sm:$0xff]  ;;  %v341_v14 = vld [vmem:[#allocation7 + $0xd8] sm:$0xff]  ;;  %p2695_p3 = scmp.ne.s32.totalorder %s1633_s10, %s2694_s9  ;;  %s2775_s17 = smov [#allocation8]  }
  0x69   : > { %2024 = vmatpush3.msra.mxu0 %v253_v2  ;;  %2059 = vmatpush3.msra.mxu1 %v345_v7  ;;  %v246_v15 = vld [vmem:[#allocation7 + $0x38] sm:$0xff]  ;;  %v340_v16 = vld [vmem:[#allocation7 + $0xd0] sm:$0xff]  ;;  %v339_v18 = vld [vmem:[#allocation7 + $0xc8] sm:$0xff]  ;;  %s2698_s16 = sshll.u32 %s2775_s17, 4  ;;  %s2699_s16 = int_to_ptr.vmem [resolvable:$false] %s2698_s16 }
  0x6a   : > { %2025 = vmatprep.subr.mxu0 %v2773_v0  ;;  %2060 = vmatprep.subr.mxu1 %v2773_v0  ;;  %v245_v17 = vld [vmem:[#allocation7 + $0x30] sm:$0xff]  ;;  %v244_v19 = vld [vmem:[#allocation7 + $0x28] sm:$0xff]  ;;  %v338_v20 = vld [vmem:[#allocation7 + $0xc0] sm:$0xff]  ;;  %p2696_p10 = pnand %p2695_p3, %p3296_p12  ;;  %s2700_s22 = scalar_lea.vmem %s2699_s16, 256 }
  0x6b   : > { %2026 = vmatpush3.msra.mxu0 %v252_v3  ;;  %2061 = vmatpush3.msra.mxu1 %v344_v8  ;;  %v243_v21 = vld [vmem:[#allocation7 + $0x20] sm:$0xff]  ;;  %v337_v22 = vld [vmem:[#allocation7 + $0xb8] sm:$0xff]  ;;  %v336_v24 = vld [vmem:[#allocation7 + $0xb0] sm:$0xff]  ;;  %p2701_p13 = scmp.lt.s32.totalorder %s1633_s10, %s2699_s16  ;;  %p2702_p0 = scmp.lt.s32.totalorder %s2700_s22, %s2694_s9 }
  0x6c   : > { %2027 = vmatprep.subr.mxu0 %v2773_v0  ;;  %2062 = vmatprep.subr.mxu1 %v2773_v0  ;;  %v242_v23 = vld [vmem:[#allocation7 + $0x18] sm:$0xff]  ;;  %v241_v25 = vld [vmem:[#allocation7 + $0x10] sm:$0xff]  ;;  %v335_v26 = vld [vmem:[#allocation7 + $0xa8] sm:$0xff]  ;;  %p2697_p2 = pneg %p2696_p10 }
  0x6d   : > { %2028 = vmatpush3.msra.mxu0 %v251_v4  ;;  %2063 = vmatpush3.msra.mxu1 %v343_v10  ;;  %v240_v27 = vld [vmem:[#allocation7 + $0x8] sm:$0xff]  ;;  %v334_v28 = vld [vmem:[#allocation7 + $0xa0] sm:$0xff]  ;;  %v333_v31 = vld [vmem:[#allocation7 + $0x98] sm:$0xff]  ;;  %p2703_p5 = por %p2702_p0, %p2701_p13 }
  0x6e   : > { %2029 = vmatprep.subr.mxu0 %v2773_v0  ;;  %2064 = vmatprep.subr.mxu1 %v2773_v0  ;;  %v239_v29 = vld [vmem:[#allocation7] sm:$0xff]  ;;  %v332_v32 = vld [vmem:[#allocation7 + $0x90] sm:$0xff]  ;;  %v331_v33 = vld [vmem:[#allocation7 + $0x88] sm:$0xff] }
  0x6f   : > { %2030 = vmatpush3.msra.mxu0 %v250_v6  ;;  %2065 = vmatpush3.msra.mxu1 %v342_v12  ;;  %v237_v30 = vld [vmem:[%s196_s21] sm:$0xff]  ;;  %v436_v36 = vld [vmem:[#allocation7 + $0x178] sm:$0xff]  ;;  %v435_v37 = vld [vmem:[#allocation7 + $0x170] sm:$0xff]  ;;  %p2704_p9 = pnand %p2703_p5, %p2697_p2 }
  0x70   : > { %2031 = vmatprep.subr.mxu0 %v2773_v0  ;;  %2066 = vmatprep.subr.mxu1 %v2773_v0  ;;  %v438_v34 = vld [vmem:[#allocation7 + $0x188] sm:$0xff]  ;;  %v437_v35 = vld [vmem:[#allocation7 + $0x180] sm:$0xff]  ;;  %v432_v40 = vld [vmem:[#allocation7 + $0x158] sm:$0xff] }
  0x71   : > { %2032 = vmatpush3.msra.mxu0 %v249_v9  ;;  %2067 = vmatpush3.msra.mxu1 %v341_v14  ;;  %v434_v38 = vld [vmem:[#allocation7 + $0x168] sm:$0xff]  ;;  %v433_v39 = vld [vmem:[#allocation7 + $0x160] sm:$0xff]  ;;  %v431_v41 = vld [vmem:[#allocation7 + $0x150] sm:$0xff] }
  0x72   : > { %2033 = vmatprep.subr.mxu0 %v2773_v0  ;;  %2068 = vmatprep.subr.mxu1 %v2773_v0  ;;  %v430_v42 = vld [vmem:[#allocation7 + $0x148] sm:$0xff]  ;;  %v429_v43 = vld [vmem:[#allocation7 + $0x140] sm:$0xff]  ;;  %v428_v44 = vld [vmem:[#allocation7 + $0x138] sm:$0xff] }
  0x73   : > { %2034 = vmatpush3.msra.mxu0 %v248_v11  ;;  %2069 = vmatpush3.msra.mxu1 %v340_v16  ;;  %v427_v45 = vld [vmem:[#allocation7 + $0x130] sm:$0xff]  ;;  %v426_v46 = vld [vmem:[#allocation7 + $0x128] sm:$0xff]  ;;  %v1747_v47 = vld [vmem:[#allocation7 + $0x80] ss:$0 sm:$0xff] }
  0x74   : > { %2035 = vmatprep.subr.mxu0 %v2773_v0  ;;  %2070 = vmatprep.subr.mxu1 %v2773_v0  ;;  %v425_v52 = vld [vmem:[#allocation7 + $0x120] sm:$0xff]  ;;  %v424_v53 = vld [vmem:[#allocation7 + $0x118] sm:$0xff]  ;;  %v423_v54 = vld [vmem:[#allocation7 + $0x110] sm:$0xff] }
  0x75   : > { %2036 = vmatpush3.msra.mxu0 %v247_v13  ;;  %2071 = vmatpush3.msra.mxu1 %v339_v18  ;;  %v530_v55 = vld [vmem:[#allocation7 + $0x210] sm:$0xff]  ;;  %v529_v56 = vld [vmem:[#allocation7 + $0x208] sm:$0xff]  ;;  %v528_v57 = vld [vmem:[#allocation7 + $0x200] sm:$0xff] }
  0x76   : > { %2037 = vmatprep.subr.mxu0 %v2773_v0  ;;  %2072 = vmatprep.subr.mxu1 %v2773_v0  ;;  %v527_v58 = vld [vmem:[#allocation7 + $0x1f8] sm:$0xff]  ;;  %v526_v59 = vld [vmem:[#allocation7 + $0x1f0] sm:$0xff]  ;;  %v525_v60 = vld [vmem:[#allocation7 + $0x1e8] sm:$0xff] }
  0x77   : > { %2038 = vmatpush3.msra.mxu0 %v246_v15  ;;  %2073 = vmatpush3.msra.mxu1 %v338_v20  ;;  %v524_v61 = vld [vmem:[#allocation7 + $0x1e0] sm:$0xff]  ;;  %v523_v62 = vld [vmem:[#allocation7 + $0x1d8] sm:$0xff]  ;;  %v522_v63 = vld [vmem:[#allocation7 + $0x1d0] sm:$0xff] }
  0x78   : > { %2039 = vmatprep.subr.mxu0 %v2773_v0  ;;  %2074 = vmatprep.subr.mxu1 %v2773_v0  ;;  %v521_v1 = vld [vmem:[#allocation7 + $0x1c8] sm:$0xff]  ;;  %v520_v2 = vld [vmem:[#allocation7 + $0x1c0] sm:$0xff]  ;;  %v519_v3 = vld [vmem:[#allocation7 + $0x1b8] sm:$0xff] }
  0x79   : > { %2040 = vmatpush3.msra.mxu0 %v245_v17  ;;  %2075 = vmatpush3.msra.mxu1 %v337_v22  ;;  %v518_v4 = vld [vmem:[#allocation7 + $0x1b0] sm:$0xff]  ;;  %v517_v5 = vld [vmem:[#allocation7 + $0x1a8] sm:$0xff]  ;;  %v516_v11 = vld [vmem:[#allocation7 + $0x1a0] sm:$0xff] }
  0x7a   : > { %2041 = vmatprep.subr.mxu0 %v2773_v0  ;;  %2076 = vmatprep.subr.mxu1 %v2773_v0  ;;  %v1748_v6 = vld [vmem:[#allocation7 + $0x108] ss:$0 sm:$0xff]  ;;  %v515_v12 = vld [vmem:[#allocation7 + $0x198] sm:$0xff]  ;;  %v621_v14 = vld [vmem:[#allocation7 + $0x290] sm:$0xff] }
  0x7b   : > { %2042 = vmatpush3.msra.mxu0 %v244_v19  ;;  %2077 = vmatpush3.msra.mxu1 %v336_v24  ;;  %v622_v13 = vld [vmem:[#allocation7 + $0x298] sm:$0xff]  ;;  %v620_v15 = vld [vmem:[#allocation7 + $0x288] sm:$0xff]  ;;  %v619_v16 = vld [vmem:[#allocation7 + $0x280] sm:$0xff] }
  0x7c   : > { %2043 = vmatprep.subr.mxu0 %v2773_v0  ;;  %2078 = vmatprep.subr.mxu1 %v2773_v0  ;;  %v618_v17 = vld [vmem:[#allocation7 + $0x278] sm:$0xff]  ;;  %v617_v18 = vld [vmem:[#allocation7 + $0x270] sm:$0xff]  ;;  %v616_v19 = vld [vmem:[#allocation7 + $0x268] sm:$0xff] }
  0x7d   : > { %2044 = vmatpush3.msra.mxu0 %v243_v21  ;;  %2079 = vmatpush3.msra.mxu1 %v335_v26  ;;  %v615_v20 = vld [vmem:[#allocation7 + $0x260] sm:$0xff]  ;;  %v614_v21 = vld [vmem:[#allocation7 + $0x258] sm:$0xff]  ;;  %v613_v22 = vld [vmem:[#allocation7 + $0x250] sm:$0xff] }
  0x7e   : > { %2045 = vmatprep.subr.mxu0 %v2773_v0  ;;  %2080 = vmatprep.subr.mxu1 %v2773_v0  ;;  %v611_v24 = vld [vmem:[#allocation7 + $0x240] sm:$0xff]  ;;  %v609_v26 = vld [vmem:[#allocation7 + $0x230] sm:$0xff] }
  0x7f   : > { %2046 = vmatpush3.msra.mxu0 %v242_v23  ;;  %2081 = vmatpush3.msra.mxu1 %v334_v28  ;;  %v612_v23 = vld [vmem:[#allocation7 + $0x248] sm:$0xff] }
  0x80   : > { %2047 = vmatprep.subr.mxu0 %v2773_v0  ;;  %2082 = vmatprep.subr.mxu1 %v2773_v0 }
  0x81   : > { %2048 = vmatpush3.msra.mxu0 %v241_v25  ;;  %2083 = vmatpush3.msra.mxu1 %v333_v31  ;;  %v610_v25 = vld [vmem:[#allocation7 + $0x238] sm:$0xff] }
  0x82   : > { %2049 = vmatprep.subr.mxu0 %v2773_v0  ;;  %2084 = vmatprep.subr.mxu1 %v2773_v0 }
  0x83   : > { %2050 = vmatpush3.msra.mxu0 %v240_v27  ;;  %2085 = vmatpush3.msra.mxu1 %v332_v32  ;;  %v1749_v27 = vld [vmem:[#allocation7 + $0x190] ss:$0 sm:$0xff]  ;;  %v713_v32 = vld [vmem:[#allocation7 + $0x320] sm:$0xff] }
  0x84   : > { %2051 = vmatprep.subr.mxu0 %v2773_v0  ;;  %2086 = vmatprep.subr.mxu1 %v2773_v0 }
  0x85   : > { %2052 = vmatpush3.msra.mxu0 %v239_v29  ;;  %2087 = vmatpush3.msra.mxu1 %v331_v33  ;;  %v712_v33 = vld [vmem:[#allocation7 + $0x318] sm:$0xff] }
  0x86   : > { %2054 = vmatmul.mubr.f32.vlgmr.msra.gmra.mxu0 %v237_v30  ;;  %2091 = vmatprep.subr.mxu0 %v2773_v0 }
  0x87   : > { %2123 = vmatprep.mubr.msk.f32.mxu0 %vm2774_vm0, %v2773_v0  ;;  %2126 = vmatprep.subr.mxu1 %v2773_v0 }
  0x88   : > { %2092 = vmatpush3.msra.mxu0 %v438_v34  ;;  %v711_v34 = vld [vmem:[#allocation7 + $0x310] sm:$0xff] }
  0x89   : > { %2093 = vmatprep.subr.mxu0 %v2773_v0 }
  0x8a   : > { %2094 = vmatpush3.msra.mxu0 %v437_v35  ;;  %v710_v35 = vld [vmem:[#allocation7 + $0x308] sm:$0xff] }
  0x8b   : > { %2095 = vmatprep.subr.mxu0 %v2773_v0 }
  0x8c   : > { %2096 = vmatpush3.msra.mxu0 %v436_v36  ;;  %v709_v36 = vld [vmem:[#allocation7 + $0x300] sm:$0xff] }
  0x8d   : > { %2097 = vmatprep.subr.mxu0 %v2773_v0 }
  0x8e   : > { %2098 = vmatpush3.msra.mxu0 %v435_v37  ;;  %v708_v37 = vld [vmem:[#allocation7 + $0x2f8] sm:$0xff] }
  0x8f   : > { %2099 = vmatprep.subr.mxu0 %v2773_v0 }
  0x90   : > { %2100 = vmatpush3.msra.mxu0 %v434_v38  ;;  %v707_v38 = vld [vmem:[#allocation7 + $0x2f0] sm:$0xff] }
  0x91   : > { %2101 = vmatprep.subr.mxu0 %v2773_v0 }
  0x92   : > { %2102 = vmatpush3.msra.mxu0 %v433_v39  ;;  %v706_v39 = vld [vmem:[#allocation7 + $0x2e8] sm:$0xff] }
  0x93   : > { %2103 = vmatprep.subr.mxu0 %v2773_v0 }
  0x94   : > { %2104 = vmatpush3.msra.mxu0 %v432_v40  ;;  %v705_v40 = vld [vmem:[#allocation7 + $0x2e0] sm:$0xff] }
  0x95   : > { %2105 = vmatprep.subr.mxu0 %v2773_v0 }
  0x96   : > { %2106 = vmatpush3.msra.mxu0 %v431_v41  ;;  %v704_v41 = vld [vmem:[#allocation7 + $0x2d8] sm:$0xff] }
  0x97   : > { %2107 = vmatprep.subr.mxu0 %v2773_v0 }
  0x98   : > { %2108 = vmatpush3.msra.mxu0 %v430_v42  ;;  %v703_v42 = vld [vmem:[#allocation7 + $0x2d0] sm:$0xff] }
  0x99   : > { %2109 = vmatprep.subr.mxu0 %v2773_v0 }
  0x9a   : > { %2110 = vmatpush3.msra.mxu0 %v429_v43  ;;  %v702_v43 = vld [vmem:[#allocation7 + $0x2c8] sm:$0xff] }
  0x9b   : > { %2111 = vmatprep.subr.mxu0 %v2773_v0 }
  0x9c   : > { %2112 = vmatpush3.msra.mxu0 %v428_v44  ;;  %v701_v44 = vld [vmem:[#allocation7 + $0x2c0] sm:$0xff] }
  0x9d   : > { %2113 = vmatprep.subr.mxu0 %v2773_v0 }
  0x9e   : > { %2114 = vmatpush3.msra.mxu0 %v427_v45  ;;  %v700_v45 = vld [vmem:[#allocation7 + $0x2b8] sm:$0xff] }
  0x9f   : > { %2115 = vmatprep.subr.mxu0 %v2773_v0 }
  0xa0   : > { %2116 = vmatpush3.msra.mxu0 %v426_v46  ;;  %v699_v46 = vld [vmem:[#allocation7 + $0x2b0] sm:$0xff] }
  0xa1   : > { %2117 = vmatprep.subr.mxu0 %v2773_v0 }
  0xa2   : > { %2118 = vmatpush3.msra.mxu0 %v425_v52 }
  0xa3   : > { %2119 = vmatprep.subr.mxu0 %v2773_v0 }
  0xa4   : > { %2120 = vmatpush3.msra.mxu0 %v424_v53 }
  0xa5   : > { %2121 = vmatprep.subr.mxu0 %v2773_v0 }
  0xa6   : > { %2122 = vmatpush3.msra.mxu0 %v423_v54 }
  0xa7   : > { %2161 = vmatprep.subr.mxu0 %v2773_v0 }
 0x146   : > { %v326_v48 = vpop.f32.mrf.mxu0 }
 0x147   : > { %v327_v49 = vadd.f32 %v1747_v47, %v326_v48  ;;  %v698_v47 = vld [vmem:[#allocation7 + $0x2a8] sm:$0xff]  ;;  %v238_v48 = vld [vmem:[%s205_s27] sm:$0xff] }
 0x148   : > { %v2055_v50 = vpop.f32.mrf.mxu0 }
 0x149   : > { %v330_v51 = vmax.f32 %v327_v49, 0.0  ;;  %v608_v49 = vld [vmem:[#allocation7 + $0x228] sm:$0xff]  ;;  %v607_v50 = vld [vmem:[#allocation7 + $0x220] sm:$0xff] }
 0x14b   : > { %2089 = vmatmul.mubr.f32.vlgmr.msra.gmra.mxu1 %v330_v51  ;;  %v1750_v51 = vld [vmem:[#allocation7 + $0x218] ss:$0 sm:$0xff] }
 0x14c   : > { %2158 = vmatprep.mubr.msk.f32.mxu1 %vm2774_vm0, %v2773_v0  ;;  %2127 = vmatpush3.msra.mxu1 %v530_v55 }
 0x14d   : > { %2128 = vmatprep.subr.mxu1 %v2773_v0 }
 0x14e   : > { %2129 = vmatpush3.msra.mxu1 %v529_v56  ;;  %v805_v56 = vld [vmem:[#allocation7 + $0x3a8] sm:$0xff] }
 0x14f   : > { %2130 = vmatprep.subr.mxu1 %v2773_v0 }
 0x150   : > { %2131 = vmatpush3.msra.mxu1 %v528_v57  ;;  %v804_v57 = vld [vmem:[#allocation7 + $0x3a0] sm:$0xff] }
 0x151   : > { %2132 = vmatprep.subr.mxu1 %v2773_v0 }
 0x152   : > { %2133 = vmatpush3.msra.mxu1 %v527_v58  ;;  %v803_v58 = vld [vmem:[#allocation7 + $0x398] sm:$0xff] }
 0x153   : > { %2134 = vmatprep.subr.mxu1 %v2773_v0 }
 0x154   : > { %2135 = vmatpush3.msra.mxu1 %v526_v59  ;;  %v802_v59 = vld [vmem:[#allocation7 + $0x390] sm:$0xff] }
 0x155   : > { %2136 = vmatprep.subr.mxu1 %v2773_v0 }
 0x156   : > { %2137 = vmatpush3.msra.mxu1 %v525_v60  ;;  %v801_v60 = vld [vmem:[#allocation7 + $0x388] sm:$0xff] }
 0x157   : > { %2138 = vmatprep.subr.mxu1 %v2773_v0 }
 0x158   : > { %2139 = vmatpush3.msra.mxu1 %v524_v61  ;;  %v800_v61 = vld [vmem:[#allocation7 + $0x380] sm:$0xff] }
 0x159   : > { %2140 = vmatprep.subr.mxu1 %v2773_v0 }
 0x15a   : > { %2141 = vmatpush3.msra.mxu1 %v523_v62  ;;  %v799_v62 = vld [vmem:[#allocation7 + $0x378] sm:$0xff] }
 0x15b   : > { %2142 = vmatprep.subr.mxu1 %v2773_v0 }
 0x15c   : > { %2143 = vmatpush3.msra.mxu1 %v522_v63  ;;  %v798_v63 = vld [vmem:[#allocation7 + $0x370] sm:$0xff] }
 0x15d   : > { %2144 = vmatprep.subr.mxu1 %v2773_v0 }
 0x15e   : > { %2145 = vmatpush3.msra.mxu1 %v521_v1  ;;  %v797_v1 = vld [vmem:[#allocation7 + $0x368] sm:$0xff] }
 0x15f   : > { %2146 = vmatprep.subr.mxu1 %v2773_v0 }
 0x160   : > { %2147 = vmatpush3.msra.mxu1 %v520_v2  ;;  %v796_v2 = vld [vmem:[#allocation7 + $0x360] sm:$0xff] }
 0x161   : > { %2148 = vmatprep.subr.mxu1 %v2773_v0 }
 0x162   : > { %2149 = vmatpush3.msra.mxu1 %v519_v3  ;;  %v795_v3 = vld [vmem:[#allocation7 + $0x358] sm:$0xff] }
 0x163   : > { %2150 = vmatprep.subr.mxu1 %v2773_v0 }
 0x164   : > { %2151 = vmatpush3.msra.mxu1 %v518_v4  ;;  %v794_v4 = vld [vmem:[#allocation7 + $0x350] sm:$0xff] }
 0x165   : > { %2152 = vmatprep.subr.mxu1 %v2773_v0 }
 0x166   : > { %2153 = vmatpush3.msra.mxu1 %v517_v5  ;;  %v793_v5 = vld [vmem:[#allocation7 + $0x348] sm:$0xff] }
 0x167   : > { %2154 = vmatprep.subr.mxu1 %v2773_v0 }
 0x168   : > { %2155 = vmatpush3.msra.mxu1 %v516_v11  ;;  %v790_v11 = vld [vmem:[#allocation7 + $0x330] sm:$0xff] }
 0x169   : > { %2156 = vmatprep.subr.mxu1 %v2773_v0 }
 0x16a   : > { %2157 = vmatpush3.msra.mxu1 %v515_v12 }
 0x16b   : > { %2196 = vmatprep.subr.mxu1 %v2773_v0 }
 0x20b   : > { %v418_v7 = vpop.f32.mrf.mxu1 }
 0x20c   : > { %v419_v8 = vadd.f32 %v1748_v6, %v418_v7  ;;  %v792_v6 = vld [vmem:[#allocation7 + $0x340] sm:$0xff]  ;;  %v1752_v7 = vld [vmem:[#allocation7 + $0x328] ss:$0 sm:$0xff] }
 0x20d   : > { %v2090_v9 = vpop.f32.mrf.mxu1 }
 0x20e   : > { %v422_v10 = vmax.f32 %v419_v8, 0.0  ;;  %v791_v8 = vld [vmem:[#allocation7 + $0x338] sm:$0xff] }
 0x210   : > { %2124 = vmatmul.mubr.f32.vlgmr.msra.gmra.mxu0 %v422_v10 }
 0x211   : > { %2193 = vmatprep.mubr.msk.f32.mxu0 %vm2774_vm0, %v2773_v0  ;;  %2162 = vmatpush3.msra.mxu0 %v622_v13 }
 0x212   : > { %2163 = vmatprep.subr.mxu0 %v2773_v0 }
 0x213   : > { %2164 = vmatpush3.msra.mxu0 %v621_v14  ;;  %v897_v14 = vld [vmem:[#allocation7 + $0x430] sm:$0xff] }
 0x214   : > { %2165 = vmatprep.subr.mxu0 %v2773_v0 }
 0x215   : > { %2166 = vmatpush3.msra.mxu0 %v620_v15  ;;  %v896_v15 = vld [vmem:[#allocation7 + $0x428] sm:$0xff] }
 0x216   : > { %2167 = vmatprep.subr.mxu0 %v2773_v0 }
 0x217   : > { %2168 = vmatpush3.msra.mxu0 %v619_v16  ;;  %v895_v16 = vld [vmem:[#allocation7 + $0x420] sm:$0xff] }
 0x218   : > { %2169 = vmatprep.subr.mxu0 %v2773_v0 }
 0x219   : > { %2170 = vmatpush3.msra.mxu0 %v618_v17  ;;  %v894_v17 = vld [vmem:[#allocation7 + $0x418] sm:$0xff] }
 0x21a   : > { %2171 = vmatprep.subr.mxu0 %v2773_v0 }
 0x21b   : > { %2172 = vmatpush3.msra.mxu0 %v617_v18  ;;  %v893_v18 = vld [vmem:[#allocation7 + $0x410] sm:$0xff] }
 0x21c   : > { %2173 = vmatprep.subr.mxu0 %v2773_v0 }
 0x21d   : > { %2174 = vmatpush3.msra.mxu0 %v616_v19  ;;  %v892_v19 = vld [vmem:[#allocation7 + $0x408] sm:$0xff] }
 0x21e   : > { %2175 = vmatprep.subr.mxu0 %v2773_v0 }
 0x21f   : > { %2176 = vmatpush3.msra.mxu0 %v615_v20  ;;  %v891_v20 = vld [vmem:[#allocation7 + $0x400] sm:$0xff] }
 0x220   : > { %2177 = vmatprep.subr.mxu0 %v2773_v0 }
 0x221   : > { %2178 = vmatpush3.msra.mxu0 %v614_v21  ;;  %v890_v21 = vld [vmem:[#allocation7 + $0x3f8] sm:$0xff] }
 0x222   : > { %2179 = vmatprep.subr.mxu0 %v2773_v0 }
 0x223   : > { %2180 = vmatpush3.msra.mxu0 %v613_v22  ;;  %v889_v22 = vld [vmem:[#allocation7 + $0x3f0] sm:$0xff] }
 0x224   : > { %2181 = vmatprep.subr.mxu0 %v2773_v0 }
 0x225   : > { %2182 = vmatpush3.msra.mxu0 %v612_v23  ;;  %v888_v23 = vld [vmem:[#allocation7 + $0x3e8] sm:$0xff] }
 0x226   : > { %2183 = vmatprep.subr.mxu0 %v2773_v0 }
 0x227   : > { %2184 = vmatpush3.msra.mxu0 %v611_v24  ;;  %v887_v24 = vld [vmem:[#allocation7 + $0x3e0] sm:$0xff] }
 0x228   : > { %2185 = vmatprep.subr.mxu0 %v2773_v0 }
 0x229   : > { %2186 = vmatpush3.msra.mxu0 %v610_v25  ;;  %v886_v25 = vld [vmem:[#allocation7 + $0x3d8] sm:$0xff] }
 0x22a   : > { %2187 = vmatprep.subr.mxu0 %v2773_v0 }
 0x22b   : > { %2188 = vmatpush3.msra.mxu0 %v609_v26  ;;  %v885_v26 = vld [vmem:[#allocation7 + $0x3d0] sm:$0xff] }
 0x22c   : > { %2189 = vmatprep.subr.mxu0 %v2773_v0 }
 0x22d   : > { %2190 = vmatpush3.msra.mxu0 %v608_v49 }
 0x22e   : > { %2191 = vmatprep.subr.mxu0 %v2773_v0 }
 0x22f   : > { %2192 = vmatpush3.msra.mxu0 %v607_v50  ;;  %v976_v50 = vld [vmem:[#allocation7 + $0x450] sm:$0xff] }
 0x230   : > { %2231 = vmatprep.subr.mxu0 %v2773_v0 }
 0x2d0   : > { %v510_v28 = vpop.f32.mrf.mxu0 }
 0x2d1   : > { %v511_v29 = vadd.f32 %v1749_v27, %v510_v28  ;;  %v884_v27 = vld [vmem:[#allocation7 + $0x3c8] sm:$0xff]  ;;  %v883_v28 = vld [vmem:[#allocation7 + $0x3c0] sm:$0xff] }
 0x2d2   : > { %v2125_v30 = vpop.f32.mrf.mxu0 }
 0x2d3   : > { %v514_v31 = vmax.f32 %v511_v29, 0.0  ;;  %v882_v29 = vld [vmem:[#allocation7 + $0x3b8] sm:$0xff] }
 0x2d4   : > { %v989_v30 = vld [vmem:[#allocation7 + $0x4b8] sm:$0xff] }
 0x2d5   : > { %2159 = vmatmul.mubr.f32.vlgmr.msra.gmra.mxu1 %v514_v31  ;;  %v988_v31 = vld [vmem:[#allocation7 + $0x4b0] sm:$0xff] }
 0x2d6   : > { %2197 = vmatpush3.msra.mxu1 %v713_v32  ;;  %2228 = vmatprep.mubr.msk.f32.mxu1 %vm2774_vm0, %v2773_v0  ;;  %v987_v32 = vld [vmem:[#allocation7 + $0x4a8] sm:$0xff] }
 0x2d7   : > { %2198 = vmatprep.subr.mxu1 %v2773_v0 }
 0x2d8   : > { %2199 = vmatpush3.msra.mxu1 %v712_v33  ;;  %v986_v33 = vld [vmem:[#allocation7 + $0x4a0] sm:$0xff] }
 0x2d9   : > { %2200 = vmatprep.subr.mxu1 %v2773_v0 }
 0x2da   : > { %2201 = vmatpush3.msra.mxu1 %v711_v34  ;;  %v985_v34 = vld [vmem:[#allocation7 + $0x498] sm:$0xff] }
 0x2db   : > { %2202 = vmatprep.subr.mxu1 %v2773_v0 }
 0x2dc   : > { %2203 = vmatpush3.msra.mxu1 %v710_v35  ;;  %v984_v35 = vld [vmem:[#allocation7 + $0x490] sm:$0xff] }
 0x2dd   : > { %2204 = vmatprep.subr.mxu1 %v2773_v0 }
 0x2de   : > { %2205 = vmatpush3.msra.mxu1 %v709_v36  ;;  %v983_v36 = vld [vmem:[#allocation7 + $0x488] sm:$0xff] }
 0x2df   : > { %2206 = vmatprep.subr.mxu1 %v2773_v0 }
 0x2e0   : > { %2207 = vmatpush3.msra.mxu1 %v708_v37  ;;  %v982_v37 = vld [vmem:[#allocation7 + $0x480] sm:$0xff] }
 0x2e1   : > { %2208 = vmatprep.subr.mxu1 %v2773_v0 }
 0x2e2   : > { %2209 = vmatpush3.msra.mxu1 %v707_v38  ;;  %v981_v38 = vld [vmem:[#allocation7 + $0x478] sm:$0xff] }
 0x2e3   : > { %2210 = vmatprep.subr.mxu1 %v2773_v0 }
 0x2e4   : > { %2211 = vmatpush3.msra.mxu1 %v706_v39  ;;  %v980_v39 = vld [vmem:[#allocation7 + $0x470] sm:$0xff] }
 0x2e5   : > { %2212 = vmatprep.subr.mxu1 %v2773_v0 }
 0x2e6   : > { %2213 = vmatpush3.msra.mxu1 %v705_v40  ;;  %v979_v40 = vld [vmem:[#allocation7 + $0x468] sm:$0xff] }
 0x2e7   : > { %2214 = vmatprep.subr.mxu1 %v2773_v0 }
 0x2e8   : > { %2215 = vmatpush3.msra.mxu1 %v704_v41  ;;  %v978_v41 = vld [vmem:[#allocation7 + $0x460] sm:$0xff] }
 0x2e9   : > { %2216 = vmatprep.subr.mxu1 %v2773_v0 }
 0x2ea   : > { %2217 = vmatpush3.msra.mxu1 %v703_v42  ;;  %v977_v42 = vld [vmem:[#allocation7 + $0x458] sm:$0xff] }
 0x2eb   : > { %2218 = vmatprep.subr.mxu1 %v2773_v0 }
 0x2ec   : > { %2219 = vmatpush3.msra.mxu1 %v702_v43 }
 0x2ed   : > { %2220 = vmatprep.subr.mxu1 %v2773_v0 }
 0x2ee   : > { %2221 = vmatpush3.msra.mxu1 %v701_v44 }
 0x2ef   : > { %2222 = vmatprep.subr.mxu1 %v2773_v0 }
 0x2f0   : > { %2223 = vmatpush3.msra.mxu1 %v700_v45  ;;  %v1753_v45 = vld [vmem:[#allocation7 + $0x3b0] ss:$0 sm:$0xff] }
 0x2f1   : > { %2224 = vmatprep.subr.mxu1 %v2773_v0 }
 0x2f2   : > { %2225 = vmatpush3.msra.mxu1 %v699_v46 }
 0x2f3   : > { %2226 = vmatprep.subr.mxu1 %v2773_v0 }
 0x2f4   : > { %2227 = vmatpush3.msra.mxu1 %v698_v47 }
 0x2f5   : > { %2229 = vmatmul.mubr.f32.vlgmr.msra.gmra.mxu1 %v238_v48  ;;  %2266 = vmatprep.subr.mxu1 %v2773_v0 }
 0x2f6   : > { %2298 = vmatprep.mubr.msk.f32.mxu1 %vm2774_vm0, %v2773_v0  ;;  %2267 = vmatpush3.msra.mxu1 %v897_v14  ;;  %v1170_v14 = vld [vmem:[#allocation7 + $0x5b0] sm:$0xff] }
 0x2f7   : > { %2268 = vmatprep.subr.mxu1 %v2773_v0 }
 0x2f8   : > { %2269 = vmatpush3.msra.mxu1 %v896_v15  ;;  %v1169_v15 = vld [vmem:[#allocation7 + $0x5a8] sm:$0xff] }
 0x2f9   : > { %2270 = vmatprep.subr.mxu1 %v2773_v0 }
 0x2fa   : > { %2271 = vmatpush3.msra.mxu1 %v895_v16  ;;  %v1168_v16 = vld [vmem:[#allocation7 + $0x5a0] sm:$0xff] }
 0x2fb   : > { %2272 = vmatprep.subr.mxu1 %v2773_v0 }
 0x2fc   : > { %2273 = vmatpush3.msra.mxu1 %v894_v17  ;;  %v1167_v17 = vld [vmem:[#allocation7 + $0x598] sm:$0xff] }
 0x2fd   : > { %2274 = vmatprep.subr.mxu1 %v2773_v0 }
 0x2fe   : > { %2275 = vmatpush3.msra.mxu1 %v893_v18  ;;  %v1166_v18 = vld [vmem:[#allocation7 + $0x590] sm:$0xff] }
 0x2ff   : > { %2276 = vmatprep.subr.mxu1 %v2773_v0 }
 0x300   : > { %2277 = vmatpush3.msra.mxu1 %v892_v19  ;;  %v1165_v19 = vld [vmem:[#allocation7 + $0x588] sm:$0xff] }
 0x301   : > { %2278 = vmatprep.subr.mxu1 %v2773_v0 }
 0x302   : > { %2279 = vmatpush3.msra.mxu1 %v891_v20  ;;  %v1164_v20 = vld [vmem:[#allocation7 + $0x580] sm:$0xff] }
 0x303   : > { %2280 = vmatprep.subr.mxu1 %v2773_v0 }
 0x304   : > { %2281 = vmatpush3.msra.mxu1 %v890_v21  ;;  %v1163_v21 = vld [vmem:[#allocation7 + $0x578] sm:$0xff] }
 0x305   : > { %2282 = vmatprep.subr.mxu1 %v2773_v0 }
 0x306   : > { %2283 = vmatpush3.msra.mxu1 %v889_v22  ;;  %v1162_v22 = vld [vmem:[#allocation7 + $0x570] sm:$0xff] }
 0x307   : > { %2284 = vmatprep.subr.mxu1 %v2773_v0 }
 0x308   : > { %2285 = vmatpush3.msra.mxu1 %v888_v23  ;;  %v1161_v23 = vld [vmem:[#allocation7 + $0x568] sm:$0xff] }
 0x309   : > { %2286 = vmatprep.subr.mxu1 %v2773_v0 }
 0x30a   : > { %2287 = vmatpush3.msra.mxu1 %v887_v24  ;;  %v1755_v24 = vld [vmem:[#allocation7 + $0x4c0] ss:$0 sm:$0xff] }
 0x30b   : > { %2288 = vmatprep.subr.mxu1 %v2773_v0 }
 0x30c   : > { %2289 = vmatpush3.msra.mxu1 %v886_v25 }
 0x30d   : > { %2290 = vmatprep.subr.mxu1 %v2773_v0 }
 0x30e   : > { %2291 = vmatpush3.msra.mxu1 %v885_v26 }
 0x30f   : > { %2292 = vmatprep.subr.mxu1 %v2773_v0 }
 0x310   : > { %2293 = vmatpush3.msra.mxu1 %v884_v27 }
 0x311   : > { %2294 = vmatprep.subr.mxu1 %v2773_v0 }
 0x312   : > { %2295 = vmatpush3.msra.mxu1 %v883_v28 }
 0x313   : > { %2296 = vmatprep.subr.mxu1 %v2773_v0 }
 0x314   : > { %2297 = vmatpush3.msra.mxu1 %v882_v29  ;;  %v1160_v29 = vld [vmem:[#allocation7 + $0x560] sm:$0xff] }
 0x315   : > { %2336 = vmatprep.subr.mxu1 %v2773_v0 }
 0x395   : > { %v602_v52 = vpop.f32.mrf.mxu1 }
 0x396   : > { %v603_v53 = vadd.f32 %v1750_v51, %v602_v52  ;;  %v975_v51 = vld [vmem:[#allocation7 + $0x448] sm:$0xff]  ;;  %v974_v52 = vld [vmem:[#allocation7 + $0x440] sm:$0xff] }
 0x397   : > { %v2160_v54 = vpop.f32.mrf.mxu1 }
 0x398   : > { %v606_v55 = vmax.f32 %v603_v53, 0.0  ;;  %v1081_v53 = vld [vmem:[#allocation7 + $0x540] sm:$0xff]  ;;  %v1080_v54 = vld [vmem:[#allocation7 + $0x538] sm:$0xff] }
 0x39a   : > { %2194 = vmatmul.mubr.f32.vlgmr.msra.gmra.mxu0 %v606_v55  ;;  %v1079_v55 = vld [vmem:[#allocation7 + $0x530] sm:$0xff] }
 0x39b   : > { %2232 = vmatpush3.msra.mxu0 %v805_v56  ;;  %2263 = vmatprep.mubr.msk.f32.mxu0 %vm2774_vm0, %v2773_v0  ;;  %v1078_v56 = vld [vmem:[#allocation7 + $0x528] sm:$0xff] }
 0x39c   : > { %2233 = vmatprep.subr.mxu0 %v2773_v0 }
 0x39d   : > { %2234 = vmatpush3.msra.mxu0 %v804_v57  ;;  %v1077_v57 = vld [vmem:[#allocation7 + $0x520] sm:$0xff] }
 0x39e   : > { %2235 = vmatprep.subr.mxu0 %v2773_v0 }
 0x39f   : > { %2236 = vmatpush3.msra.mxu0 %v803_v58  ;;  %v1076_v58 = vld [vmem:[#allocation7 + $0x518] sm:$0xff] }
 0x3a0   : > { %2237 = vmatprep.subr.mxu0 %v2773_v0 }
 0x3a1   : > { %2238 = vmatpush3.msra.mxu0 %v802_v59  ;;  %v1075_v59 = vld [vmem:[#allocation7 + $0x510] sm:$0xff] }
 0x3a2   : > { %2239 = vmatprep.subr.mxu0 %v2773_v0 }
 0x3a3   : > { %2240 = vmatpush3.msra.mxu0 %v801_v60  ;;  %v1074_v60 = vld [vmem:[#allocation7 + $0x508] sm:$0xff] }
 0x3a4   : > { %2241 = vmatprep.subr.mxu0 %v2773_v0 }
 0x3a5   : > { %2242 = vmatpush3.msra.mxu0 %v800_v61  ;;  %v1073_v61 = vld [vmem:[#allocation7 + $0x500] sm:$0xff] }
 0x3a6   : > { %2243 = vmatprep.subr.mxu0 %v2773_v0 }
 0x3a7   : > { %2244 = vmatpush3.msra.mxu0 %v799_v62  ;;  %v1072_v62 = vld [vmem:[#allocation7 + $0x4f8] sm:$0xff] }
 0x3a8   : > { %2245 = vmatprep.subr.mxu0 %v2773_v0 }
 0x3a9   : > { %2246 = vmatpush3.msra.mxu0 %v798_v63  ;;  %v1071_v63 = vld [vmem:[#allocation7 + $0x4f0] sm:$0xff] }
 0x3aa   : > { %2247 = vmatprep.subr.mxu0 %v2773_v0 }
 0x3ab   : > { %2248 = vmatpush3.msra.mxu0 %v797_v1  ;;  %v1070_v1 = vld [vmem:[#allocation7 + $0x4e8] sm:$0xff] }
 0x3ac   : > { %2249 = vmatprep.subr.mxu0 %v2773_v0 }
 0x3ad   : > { %2250 = vmatpush3.msra.mxu0 %v796_v2  ;;  %v1069_v2 = vld [vmem:[#allocation7 + $0x4e0] sm:$0xff] }
 0x3ae   : > { %2251 = vmatprep.subr.mxu0 %v2773_v0 }
 0x3af   : > { %2252 = vmatpush3.msra.mxu0 %v795_v3  ;;  %v1754_v3 = vld [vmem:[#allocation7 + $0x438] ss:$0 sm:$0xff] }
 0x3b0   : > { %2253 = vmatprep.subr.mxu0 %v2773_v0 }
 0x3b1   : > { %2254 = vmatpush3.msra.mxu0 %v794_v4 }
 0x3b2   : > { %2255 = vmatprep.subr.mxu0 %v2773_v0 }
 0x3b3   : > { %2256 = vmatpush3.msra.mxu0 %v793_v5 }
 0x3b4   : > { %2257 = vmatprep.subr.mxu0 %v2773_v0 }
 0x3b5   : > { %v785_v9 = vpop.f32.mrf.mxu1  ;;  %2258 = vmatpush3.msra.mxu0 %v792_v6 }
 0x3b6   : > { %v786_v10 = vadd.f32 %v1752_v7, %v785_v9  ;;  %2259 = vmatprep.subr.mxu0 %v2773_v0  ;;  %v1067_v9 = vld [vmem:[#allocation7 + $0x4d0] sm:$0xff] }
 0x3b7   : > { %v2230_v12 = vpop.f32.mrf.mxu1  ;;  %2260 = vmatpush3.msra.mxu0 %v791_v8  ;;  %v1068_v8 = vld [vmem:[#allocation7 + $0x4d8] sm:$0xff] }
 0x3b8   : > { %v789_v13 = vmax.f32 %v786_v10, 0.0  ;;  %2261 = vmatprep.subr.mxu0 %v2773_v0  ;;  %v1066_v10 = vld [vmem:[#allocation7 + $0x4c8] sm:$0xff]  ;;  %v1172_v12 = vld [vmem:[#allocation7 + $0x5c0] sm:$0xff] }
 0x3b9   : > { %2262 = vmatpush3.msra.mxu0 %v790_v11  ;;  %v1173_v11 = vld [vmem:[#allocation7 + $0x5c8] sm:$0xff] }
 0x3ba   : > { %2264 = vmatmul.mubr.f32.vlgmr.msra.gmra.mxu0 %v789_v13  ;;  %2301 = vmatprep.subr.mxu0 %v2773_v0  ;;  %v1171_v13 = vld [vmem:[#allocation7 + $0x5b8] sm:$0xff] }
 0x3bb   : > { %2333 = vmatprep.mubr.msk.f32.mxu0 %vm2774_vm0, %v2773_v0  ;;  %2302 = vmatpush3.msra.mxu0 %v989_v30  ;;  %v1159_v30 = vld [vmem:[#allocation7 + $0x558] sm:$0xff] }
 0x3bc   : > { %2303 = vmatprep.subr.mxu0 %v2773_v0 }
 0x3bd   : > { %2304 = vmatpush3.msra.mxu0 %v988_v31  ;;  %v1158_v31 = vld [vmem:[#allocation7 + $0x550] sm:$0xff] }
 0x3be   : > { %2305 = vmatprep.subr.mxu0 %v2773_v0 }
 0x3bf   : > { %2306 = vmatpush3.msra.mxu0 %v987_v32  ;;  %v1265_v32 = vld [vmem:[#allocation7 + $0x650] sm:$0xff] }
 0x3c0   : > { %2307 = vmatprep.subr.mxu0 %v2773_v0 }
 0x3c1   : > { %2308 = vmatpush3.msra.mxu0 %v986_v33  ;;  %v1264_v33 = vld [vmem:[#allocation7 + $0x648] sm:$0xff] }
 0x3c2   : > { %2309 = vmatprep.subr.mxu0 %v2773_v0 }
 0x3c3   : > { %2310 = vmatpush3.msra.mxu0 %v985_v34  ;;  %v1263_v34 = vld [vmem:[#allocation7 + $0x640] sm:$0xff] }
 0x3c4   : > { %2311 = vmatprep.subr.mxu0 %v2773_v0 }
 0x3c5   : > { %2312 = vmatpush3.msra.mxu0 %v984_v35  ;;  %v1262_v35 = vld [vmem:[#allocation7 + $0x638] sm:$0xff] }
 0x3c6   : > { %2313 = vmatprep.subr.mxu0 %v2773_v0 }
 0x3c7   : > { %2314 = vmatpush3.msra.mxu0 %v983_v36  ;;  %v1261_v36 = vld [vmem:[#allocation7 + $0x630] sm:$0xff] }
 0x3c8   : > { %2315 = vmatprep.subr.mxu0 %v2773_v0 }
 0x3c9   : > { %2316 = vmatpush3.msra.mxu0 %v982_v37  ;;  %v1260_v37 = vld [vmem:[#allocation7 + $0x628] sm:$0xff] }
 0x3ca   : > { %2317 = vmatprep.subr.mxu0 %v2773_v0 }
 0x3cb   : > { %2318 = vmatpush3.msra.mxu0 %v981_v38  ;;  %v1259_v38 = vld [vmem:[#allocation7 + $0x620] sm:$0xff] }
 0x3cc   : > { %2319 = vmatprep.subr.mxu0 %v2773_v0 }
 0x3cd   : > { %2320 = vmatpush3.msra.mxu0 %v980_v39  ;;  %v1258_v39 = vld [vmem:[#allocation7 + $0x618] sm:$0xff] }
 0x3ce   : > { %2321 = vmatprep.subr.mxu0 %v2773_v0 }
 0x3cf   : > { %2322 = vmatpush3.msra.mxu0 %v979_v40  ;;  %v1257_v40 = vld [vmem:[#allocation7 + $0x610] sm:$0xff] }
 0x3d0   : > { %2323 = vmatprep.subr.mxu0 %v2773_v0 }
 0x3d1   : > { %2324 = vmatpush3.msra.mxu0 %v978_v41  ;;  %v1256_v41 = vld [vmem:[#allocation7 + $0x608] sm:$0xff] }
 0x3d2   : > { %2325 = vmatprep.subr.mxu0 %v2773_v0 }
 0x3d3   : > { %2326 = vmatpush3.msra.mxu0 %v977_v42  ;;  %v1255_v42 = vld [vmem:[#allocation7 + $0x600] sm:$0xff] }
 0x3d4   : > { %2327 = vmatprep.subr.mxu0 %v2773_v0 }
 0x3d5   : > { %2328 = vmatpush3.msra.mxu0 %v976_v50 }
 0x3d6   : > { %2329 = vmatprep.subr.mxu0 %v2773_v0 }
 0x3d7   : > { %2330 = vmatpush3.msra.mxu0 %v975_v51 }
 0x3d8   : > { %2331 = vmatprep.subr.mxu0 %v2773_v0 }
 0x3d9   : > { %2332 = vmatpush3.msra.mxu0 %v974_v52 }
 0x3da   : > { %2371 = vmatprep.subr.mxu0 %v2773_v0 }
 0x45a   : > { %v3123_v43 = vpop.f32.mrf.mxu0 }
 0x45c   : > { %v2195_v44 = vpop.f32.mrf.mxu0 }
 0x45d   : > { %v1254_v44 = vld [vmem:[#allocation7 + $0x5f8] sm:$0xff] }
 0x47a   : > { %v877_v46 = vpop.f32.mrf.mxu0 }
 0x47b   : > { %v878_v47 = vadd.f32 %v1753_v45, %v877_v46  ;;  %v1253_v45 = vld [vmem:[#allocation7 + $0x5f0] sm:$0xff]  ;;  %v1751_v46 = vld [vmem:[#allocation7 + $0x2a0] ss:$0 sm:$0xff] }
 0x47c   : > { %v2265_v48 = vpop.f32.mrf.mxu0 }
 0x47d   : > { %v881_v49 = vmax.f32 %v878_v47, 0.0  ;;  %v1756_v47 = vld [vmem:[#allocation7 + $0x548] ss:$0 sm:$0xff] }
 0x47f   : > { %2299 = vmatmul.mubr.f32.vlgmr.msra.gmra.mxu1 %v881_v49  ;;  %v695_v49 = vadd.f32 %v1751_v46, %v3123_v43  ;;  %v1355_v43 = vld [vmem:[#allocation7 + $0x6c8] sm:$0xff]  ;;  %v1530_v46 = vld [vmem:[#allocation7 + $0x790] sm:$0xff] }
 0x480   : > { %2368 = vmatprep.mubr.msk.f32.mxu1 %vm2774_vm0, %v2773_v0  ;;  %2337 = vmatpush3.msra.mxu1 %v1081_v53  ;;  %v1252_v53 = vld [vmem:[#allocation7 + $0x5e8] sm:$0xff] }
 0x481   : > { %2338 = vmatprep.subr.mxu1 %v2773_v0 }
 0x482   : > { %2339 = vmatpush3.msra.mxu1 %v1080_v54  ;;  %v1251_v54 = vld [vmem:[#allocation7 + $0x5e0] sm:$0xff] }
 0x483   : > { %2340 = vmatprep.subr.mxu1 %v2773_v0 }
 0x484   : > { %2341 = vmatpush3.msra.mxu1 %v1079_v55  ;;  %v1250_v55 = vld [vmem:[#allocation7 + $0x5d8] sm:$0xff] }
 0x485   : > { %2342 = vmatprep.subr.mxu1 %v2773_v0 }
 0x486   : > { %2343 = vmatpush3.msra.mxu1 %v1078_v56  ;;  %v1357_v56 = vld [vmem:[#allocation7 + $0x6d8] sm:$0xff] }
 0x487   : > { %2344 = vmatprep.subr.mxu1 %v2773_v0 }
 0x488   : > { %2345 = vmatpush3.msra.mxu1 %v1077_v57  ;;  %v1356_v57 = vld [vmem:[#allocation7 + $0x6d0] sm:$0xff] }
 0x489   : > { %2346 = vmatprep.subr.mxu1 %v2773_v0 }
 0x48a   : > { %2347 = vmatpush3.msra.mxu1 %v1076_v58  ;;  %v1354_v58 = vld [vmem:[#allocation7 + $0x6c0] sm:$0xff] }
 0x48b   : > { %2348 = vmatprep.subr.mxu1 %v2773_v0 }
 0x48c   : > { %2349 = vmatpush3.msra.mxu1 %v1075_v59  ;;  %v1353_v59 = vld [vmem:[#allocation7 + $0x6b8] sm:$0xff] }
 0x48d   : > { %2350 = vmatprep.subr.mxu1 %v2773_v0 }
 0x48e   : > { %2351 = vmatpush3.msra.mxu1 %v1074_v60  ;;  %v1352_v60 = vld [vmem:[#allocation7 + $0x6b0] sm:$0xff] }
 0x48f   : > { %2352 = vmatprep.subr.mxu1 %v2773_v0 }
 0x490   : > { %2353 = vmatpush3.msra.mxu1 %v1073_v61  ;;  %v1351_v61 = vld [vmem:[#allocation7 + $0x6a8] sm:$0xff] }
 0x491   : > { %2354 = vmatprep.subr.mxu1 %v2773_v0 }
 0x492   : > { %2355 = vmatpush3.msra.mxu1 %v1072_v62  ;;  %v1350_v62 = vld [vmem:[#allocation7 + $0x6a0] sm:$0xff] }
 0x493   : > { %2356 = vmatprep.subr.mxu1 %v2773_v0 }
 0x494   : > { %2357 = vmatpush3.msra.mxu1 %v1071_v63  ;;  %v1349_v63 = vld [vmem:[#allocation7 + $0x698] sm:$0xff] }
 0x495   : > { %2358 = vmatprep.subr.mxu1 %v2773_v0 }
 0x496   : > { %2359 = vmatpush3.msra.mxu1 %v1070_v1  ;;  %v1348_v1 = vld [vmem:[#allocation7 + $0x690] sm:$0xff] }
 0x497   : > { %2360 = vmatprep.subr.mxu1 %v2773_v0 }
 0x498   : > { %2361 = vmatpush3.msra.mxu1 %v1069_v2  ;;  %v1347_v2 = vld [vmem:[#allocation7 + $0x688] sm:$0xff] }
 0x499   : > { %2362 = vmatprep.subr.mxu1 %v2773_v0 }
 0x49a   : > { %2363 = vmatpush3.msra.mxu1 %v1068_v8 }
 0x49b   : > { %2364 = vmatprep.subr.mxu1 %v2773_v0 }
 0x49c   : > { %2365 = vmatpush3.msra.mxu1 %v1067_v9 }
 0x49d   : > { %2366 = vmatprep.subr.mxu1 %v2773_v0 }
 0x49e   : > { %2367 = vmatpush3.msra.mxu1 %v1066_v10  ;;  %v1344_v10 = vld [vmem:[#allocation7 + $0x670] sm:$0xff] }
 0x49f   : > { %2406 = vmatprep.subr.mxu1 %v2773_v0 }
 0x53f   : > { %v969_v4 = vpop.f32.mrf.mxu1 }
 0x540   : > { %v970_v5 = vadd.f32 %v1754_v3, %v969_v4  ;;  %v1346_v3 = vld [vmem:[#allocation7 + $0x680] sm:$0xff]  ;;  %v1345_v4 = vld [vmem:[#allocation7 + $0x678] sm:$0xff] }
 0x541   : > { %v2300_v6 = vpop.f32.mrf.mxu1 }
 0x542   : > { %v973_v7 = vmax.f32 %v970_v5, 0.0  ;;  %v1757_v5 = vld [vmem:[#allocation7 + $0x5d0] ss:$0 sm:$0xff] }
 0x544   : > { %2334 = vmatmul.mubr.f32.vlgmr.msra.gmra.mxu0 %v973_v7 }
 0x545   : > { %2403 = vmatprep.mubr.msk.f32.mxu0 %vm2774_vm0, %v2773_v0  ;;  %2372 = vmatpush3.msra.mxu0 %v1173_v11  ;;  %v1343_v11 = vld [vmem:[#allocation7 + $0x668] sm:$0xff] }
 0x546   : > { %2373 = vmatprep.subr.mxu0 %v2773_v0 }
 0x547   : > { %2374 = vmatpush3.msra.mxu0 %v1172_v12  ;;  %v1342_v12 = vld [vmem:[#allocation7 + $0x660] sm:$0xff] }
 0x548   : > { %2375 = vmatprep.subr.mxu0 %v2773_v0 }
 0x549   : > { %2376 = vmatpush3.msra.mxu0 %v1171_v13  ;;  %v1449_v13 = vld [vmem:[#allocation7 + $0x760] sm:$0xff] }
 0x54a   : > { %2377 = vmatprep.subr.mxu0 %v2773_v0 }
 0x54b   : > { %2378 = vmatpush3.msra.mxu0 %v1170_v14  ;;  %v1448_v14 = vld [vmem:[#allocation7 + $0x758] sm:$0xff] }
 0x54c   : > { %2379 = vmatprep.subr.mxu0 %v2773_v0 }
 0x54d   : > { %2380 = vmatpush3.msra.mxu0 %v1169_v15  ;;  %v1447_v15 = vld [vmem:[#allocation7 + $0x750] sm:$0xff] }
 0x54e   : > { %2381 = vmatprep.subr.mxu0 %v2773_v0 }
 0x54f   : > { %2382 = vmatpush3.msra.mxu0 %v1168_v16  ;;  %v1446_v16 = vld [vmem:[#allocation7 + $0x748] sm:$0xff] }
 0x550   : > { %2383 = vmatprep.subr.mxu0 %v2773_v0 }
 0x551   : > { %2384 = vmatpush3.msra.mxu0 %v1167_v17  ;;  %v1445_v17 = vld [vmem:[#allocation7 + $0x740] sm:$0xff] }
 0x552   : > { %2385 = vmatprep.subr.mxu0 %v2773_v0 }
 0x553   : > { %2386 = vmatpush3.msra.mxu0 %v1166_v18  ;;  %v1444_v18 = vld [vmem:[#allocation7 + $0x738] sm:$0xff] }
 0x554   : > { %2387 = vmatprep.subr.mxu0 %v2773_v0 }
 0x555   : > { %2388 = vmatpush3.msra.mxu0 %v1165_v19  ;;  %v1443_v19 = vld [vmem:[#allocation7 + $0x730] sm:$0xff] }
 0x556   : > { %2389 = vmatprep.subr.mxu0 %v2773_v0 }
 0x557   : > { %2390 = vmatpush3.msra.mxu0 %v1164_v20  ;;  %v1442_v20 = vld [vmem:[#allocation7 + $0x728] sm:$0xff] }
 0x558   : > { %2391 = vmatprep.subr.mxu0 %v2773_v0 }
 0x559   : > { %2392 = vmatpush3.msra.mxu0 %v1163_v21  ;;  %v1441_v21 = vld [vmem:[#allocation7 + $0x720] sm:$0xff] }
 0x55a   : > { %2393 = vmatprep.subr.mxu0 %v2773_v0 }
 0x55b   : > { %2394 = vmatpush3.msra.mxu0 %v1162_v22  ;;  %v1440_v22 = vld [vmem:[#allocation7 + $0x718] sm:$0xff] }
 0x55c   : > { %2395 = vmatprep.subr.mxu0 %v2773_v0 }
 0x55d   : > { %2396 = vmatpush3.msra.mxu0 %v1161_v23  ;;  %v1439_v23 = vld [vmem:[#allocation7 + $0x710] sm:$0xff] }
 0x55e   : > { %2397 = vmatprep.subr.mxu0 %v2773_v0 }
 0x55f   : > { %2398 = vmatpush3.msra.mxu0 %v1160_v29 }
 0x560   : > { %2399 = vmatprep.subr.mxu0 %v2773_v0 }
 0x561   : > { %2400 = vmatpush3.msra.mxu0 %v1159_v30 }
 0x562   : > { %2401 = vmatprep.subr.mxu0 %v2773_v0 }
 0x563   : > { %2402 = vmatpush3.msra.mxu0 %v1158_v31  ;;  %v1436_v31 = vld [vmem:[#allocation7 + $0x6f8] sm:$0xff] }
 0x564   : > { %2441 = vmatprep.subr.mxu0 %v2773_v0 }
 0x604   : > { %v1061_v25 = vpop.f32.mrf.mxu0 }
 0x605   : > { %v1062_v26 = vadd.f32 %v1755_v24, %v1061_v25  ;;  %v1438_v24 = vld [vmem:[#allocation7 + $0x708] sm:$0xff]  ;;  %v1437_v25 = vld [vmem:[#allocation7 + $0x700] sm:$0xff] }
 0x606   : > { %v2335_v27 = vpop.f32.mrf.mxu0 }
 0x607   : > { %v1065_v28 = vmax.f32 %v1062_v26, 0.0  ;;  %v1758_v26 = vld [vmem:[#allocation7 + $0x658] ss:$0 sm:$0xff] }
 0x609   : > { %2369 = vmatmul.mubr.f32.vlgmr.msra.gmra.mxu1 %v1065_v28 }
 0x60a   : > { %2438 = vmatprep.mubr.msk.f32.mxu1 %vm2774_vm0, %v2773_v0  ;;  %2407 = vmatpush3.msra.mxu1 %v1265_v32  ;;  %v1435_v32 = vld [vmem:[#allocation7 + $0x6f0] sm:$0xff] }
 0x60b   : > { %2408 = vmatprep.subr.mxu1 %v2773_v0 }
 0x60c   : > { %2409 = vmatpush3.msra.mxu1 %v1264_v33  ;;  %v1434_v33 = vld [vmem:[#allocation7 + $0x6e8] sm:$0xff] }
 0x60d   : > { %2410 = vmatprep.subr.mxu1 %v2773_v0 }
 0x60e   : > { %2411 = vmatpush3.msra.mxu1 %v1263_v34  ;;  %v1541_v34 = vld [vmem:[#allocation7 + $0x7e8] sm:$0xff] }
 0x60f   : > { %2412 = vmatprep.subr.mxu1 %v2773_v0 }
 0x610   : > { %2413 = vmatpush3.msra.mxu1 %v1262_v35  ;;  %v1540_v35 = vld [vmem:[#allocation7 + $0x7e0] sm:$0xff] }
 0x611   : > { %2414 = vmatprep.subr.mxu1 %v2773_v0 }
 0x612   : > { %2415 = vmatpush3.msra.mxu1 %v1261_v36  ;;  %v1539_v36 = vld [vmem:[#allocation7 + $0x7d8] sm:$0xff] }
 0x613   : > { %2416 = vmatprep.subr.mxu1 %v2773_v0 }
 0x614   : > { %2417 = vmatpush3.msra.mxu1 %v1260_v37  ;;  %v1538_v37 = vld [vmem:[#allocation7 + $0x7d0] sm:$0xff] }
 0x615   : > { %2418 = vmatprep.subr.mxu1 %v2773_v0 }
 0x616   : > { %2419 = vmatpush3.msra.mxu1 %v1259_v38  ;;  %v1537_v38 = vld [vmem:[#allocation7 + $0x7c8] sm:$0xff] }
 0x617   : > { %2420 = vmatprep.subr.mxu1 %v2773_v0 }
 0x618   : > { %2421 = vmatpush3.msra.mxu1 %v1258_v39  ;;  %v1536_v39 = vld [vmem:[#allocation7 + $0x7c0] sm:$0xff] }
 0x619   : > { %2422 = vmatprep.subr.mxu1 %v2773_v0 }
 0x61a   : > { %2423 = vmatpush3.msra.mxu1 %v1257_v40  ;;  %v1535_v40 = vld [vmem:[#allocation7 + $0x7b8] sm:$0xff] }
 0x61b   : > { %2424 = vmatprep.subr.mxu1 %v2773_v0 }
 0x61c   : > { %2425 = vmatpush3.msra.mxu1 %v1256_v41  ;;  %v1534_v41 = vld [vmem:[#allocation7 + $0x7b0] sm:$0xff] }
 0x61d   : > { %2426 = vmatprep.subr.mxu1 %v2773_v0 }
 0x61e   : > { %2427 = vmatpush3.msra.mxu1 %v1255_v42  ;;  %v1533_v42 = vld [vmem:[#allocation7 + $0x7a8] sm:$0xff] }
 0x61f   : > { %2428 = vmatprep.subr.mxu1 %v2773_v0 }
 0x620   : > { %2429 = vmatpush3.msra.mxu1 %v1254_v44  ;;  %v1532_v44 = vld [vmem:[#allocation7 + $0x7a0] sm:$0xff] }
 0x621   : > { %2430 = vmatprep.subr.mxu1 %v2773_v0 }
 0x622   : > { %2431 = vmatpush3.msra.mxu1 %v1253_v45  ;;  %v1531_v45 = vld [vmem:[#allocation7 + $0x798] sm:$0xff] }
 0x623   : > { %2432 = vmatprep.subr.mxu1 %v2773_v0 }
 0x624   : > { %2433 = vmatpush3.msra.mxu1 %v1252_v53  ;;  %v1528_v53 = vld [vmem:[#allocation7 + $0x780] sm:$0xff] }
 0x625   : > { %2434 = vmatprep.subr.mxu1 %v2773_v0 }
 0x626   : > { %2435 = vmatpush3.msra.mxu1 %v1251_v54  ;;  %v1527_v54 = vld [vmem:[#allocation7 + $0x778] sm:$0xff] }
 0x627   : > { %2436 = vmatprep.subr.mxu1 %v2773_v0 }
 0x628   : > { %2437 = vmatpush3.msra.mxu1 %v1250_v55  ;;  %v1526_v55 = vld [vmem:[#allocation7 + $0x770] sm:$0xff] }
 0x629   : > { %2476 = vmatprep.subr.mxu1 %v2773_v0 }
 0x6c9   : > { %v1153_v48 = vpop.f32.mrf.mxu1 }
 0x6ca   : > { %v1154_v50 = vadd.f32 %v1756_v47, %v1153_v48  ;;  %v1529_v47 = vld [vmem:[#allocation7 + $0x788] sm:$0xff]  ;;  %v1759_v48 = vld [vmem:[#allocation7 + $0x6e0] ss:$0 sm:$0xff] }
 0x6cb   : > { %v2370_v51 = vpop.f32.mrf.mxu1 }
 0x6cc   : > { %v1157_v52 = vsub.f32 %v695_v49, %v1154_v50 }
 0x6ce   : > { %2404 = vmatmul.mubr.f32.vlgmr.msra.gmra.mxu0 %v1157_v52 }
 0x6cf   : > { %2473 = vmatprep.mubr.msk.f32.mxu0 %vm2774_vm0, %v2773_v0  ;;  %2442 = vmatpush3.msra.mxu0 %v1357_v56  ;;  %v1760_v56 = vld [vmem:[#allocation7 + $0x768] ss:$0 sm:$0xff] }
 0x6d0   : > { %2443 = vmatprep.subr.mxu0 %v2773_v0 }
 0x6d1   : > { %2444 = vmatpush3.msra.mxu0 %v1356_v57 }
 0x6d2   : > { %2445 = vmatprep.subr.mxu0 %v2773_v0 }
 0x6d3   : > { %2446 = vmatpush3.msra.mxu0 %v1355_v43 }
 0x6d4   : > { %2447 = vmatprep.subr.mxu0 %v2773_v0 }
 0x6d5   : > { %2448 = vmatpush3.msra.mxu0 %v1354_v58 }
 0x6d6   : > { %2449 = vmatprep.subr.mxu0 %v2773_v0 }
 0x6d7   : > { %2450 = vmatpush3.msra.mxu0 %v1353_v59 }
 0x6d8   : > { %2451 = vmatprep.subr.mxu0 %v2773_v0 }
 0x6d9   : > { %2452 = vmatpush3.msra.mxu0 %v1352_v60  ;;  %v1761_v60 = vld [vmem:[#allocation7 + $0x7f0] ss:$0 sm:$0xff] }
 0x6da   : > { %2453 = vmatprep.subr.mxu0 %v2773_v0 }
 0x6db   : > { %2454 = vmatpush3.msra.mxu0 %v1351_v61 }
 0x6dc   : > { %2455 = vmatprep.subr.mxu0 %v2773_v0 }
 0x6dd   : > { %2456 = vmatpush3.msra.mxu0 %v1350_v62 }
 0x6de   : > { %2457 = vmatprep.subr.mxu0 %v2773_v0 }
 0x6df   : > { %2458 = vmatpush3.msra.mxu0 %v1349_v63 }
 0x6e0   : > { %2459 = vmatprep.subr.mxu0 %v2773_v0 }
 0x6e1   : > { %2460 = vmatpush3.msra.mxu0 %v1348_v1 }
 0x6e2   : > { %2461 = vmatprep.subr.mxu0 %v2773_v0 }
 0x6e3   : > { %2462 = vmatpush3.msra.mxu0 %v1347_v2 }
 0x6e4   : > { %2463 = vmatprep.subr.mxu0 %v2773_v0 }
 0x6e5   : > { %2464 = vmatpush3.msra.mxu0 %v1346_v3 }
 0x6e6   : > { %2465 = vmatprep.subr.mxu0 %v2773_v0 }
 0x6e7   : > { %2466 = vmatpush3.msra.mxu0 %v1345_v4 }
 0x6e8   : > { %2467 = vmatprep.subr.mxu0 %v2773_v0 }
 0x6e9   : > { %2468 = vmatpush3.msra.mxu0 %v1344_v10 }
 0x6ea   : > { %2469 = vmatprep.subr.mxu0 %v2773_v0 }
 0x6eb   : > { %2470 = vmatpush3.msra.mxu0 %v1343_v11 }
 0x6ec   : > { %2471 = vmatprep.subr.mxu0 %v2773_v0 }
 0x6ed   : > { %2472 = vmatpush3.msra.mxu0 %v1342_v12 }
 0x6ee   : > { %2511 = vmatprep.subr.mxu0 %v2773_v0 }
 0x78e   : > { %v1245_v6 = vpop.f32.mrf.mxu0 }
 0x78f   : > { %v1246_v7 = vadd.f32 %v1757_v5, %v1245_v6 }
 0x790   : > { %v2405_v8 = vpop.f32.mrf.mxu0 }
 0x791   : > { %v1249_v9 = vmax.f32 %v1246_v7, 0.0 }
 0x793   : > { %2439 = vmatmul.mubr.f32.vlgmr.msra.gmra.mxu1 %v1249_v9 }
 0x794   : > { %2508 = vmatprep.mubr.msk.f32.mxu1 %vm2774_vm0, %v2773_v0  ;;  %2477 = vmatpush3.msra.mxu1 %v1449_v13 }
 0x795   : > { %2478 = vmatprep.subr.mxu1 %v2773_v0 }
 0x796   : > { %2479 = vmatpush3.msra.mxu1 %v1448_v14 }
 0x797   : > { %2480 = vmatprep.subr.mxu1 %v2773_v0 }
 0x798   : > { %2481 = vmatpush3.msra.mxu1 %v1447_v15 }
 0x799   : > { %2482 = vmatprep.subr.mxu1 %v2773_v0 }
 0x79a   : > { %2483 = vmatpush3.msra.mxu1 %v1446_v16 }
 0x79b   : > { %2484 = vmatprep.subr.mxu1 %v2773_v0 }
 0x79c   : > { %2485 = vmatpush3.msra.mxu1 %v1445_v17 }
 0x79d   : > { %2486 = vmatprep.subr.mxu1 %v2773_v0 }
 0x79e   : > { %2487 = vmatpush3.msra.mxu1 %v1444_v18 }
 0x79f   : > { %2488 = vmatprep.subr.mxu1 %v2773_v0 }
 0x7a0   : > { %2489 = vmatpush3.msra.mxu1 %v1443_v19 }
 0x7a1   : > { %2490 = vmatprep.subr.mxu1 %v2773_v0 }
 0x7a2   : > { %2491 = vmatpush3.msra.mxu1 %v1442_v20 }
 0x7a3   : > { %2492 = vmatprep.subr.mxu1 %v2773_v0 }
 0x7a4   : > { %2493 = vmatpush3.msra.mxu1 %v1441_v21 }
 0x7a5   : > { %2494 = vmatprep.subr.mxu1 %v2773_v0 }
 0x7a6   : > { %2495 = vmatpush3.msra.mxu1 %v1440_v22 }
 0x7a7   : > { %2496 = vmatprep.subr.mxu1 %v2773_v0 }
 0x7a8   : > { %2497 = vmatpush3.msra.mxu1 %v1439_v23 }
 0x7a9   : > { %2498 = vmatprep.subr.mxu1 %v2773_v0 }
 0x7aa   : > { %2499 = vmatpush3.msra.mxu1 %v1438_v24 }
 0x7ab   : > { %2500 = vmatprep.subr.mxu1 %v2773_v0 }
 0x7ac   : > { %2501 = vmatpush3.msra.mxu1 %v1437_v25 }
 0x7ad   : > { %2502 = vmatprep.subr.mxu1 %v2773_v0 }
 0x7ae   : > { %2503 = vmatpush3.msra.mxu1 %v1436_v31 }
 0x7af   : > { %2504 = vmatprep.subr.mxu1 %v2773_v0 }
 0x7b0   : > { %2505 = vmatpush3.msra.mxu1 %v1435_v32 }
 0x7b1   : > { %2506 = vmatprep.subr.mxu1 %v2773_v0 }
 0x7b2   : > { %2507 = vmatpush3.msra.mxu1 %v1434_v33 }
 0x853   : > { %v1337_v27 = vpop.f32.mrf.mxu1 }
 0x854   : > { %v1338_v28 = vadd.f32 %v1758_v26, %v1337_v27 }
 0x855   : > { %v2440_v29 = vpop.f32.mrf.mxu1 }
 0x856   : > { %v1341_v30 = vmax.f32 %v1338_v28, 0.0 }
 0x858   : > { %2474 = vmatmul.mubr.f32.vlgmr.msra.gmra.mxu0 %v1341_v30 }
 0x859   : > { %2543 = vmatprep.mubr.msk.f32.mxu0 %vm2774_vm0, %v2773_v0  ;;  %2512 = vmatpush3.msra.mxu0 %v1541_v34 }
 0x85a   : > { %2513 = vmatprep.subr.mxu0 %v2773_v0 }
 0x85b   : > { %2514 = vmatpush3.msra.mxu0 %v1540_v35 }
 0x85c   : > { %2515 = vmatprep.subr.mxu0 %v2773_v0 }
 0x85d   : > { %2516 = vmatpush3.msra.mxu0 %v1539_v36 }
 0x85e   : > { %2517 = vmatprep.subr.mxu0 %v2773_v0 }
 0x85f   : > { %2518 = vmatpush3.msra.mxu0 %v1538_v37 }
 0x860   : > { %2519 = vmatprep.subr.mxu0 %v2773_v0 }
 0x861   : > { %2520 = vmatpush3.msra.mxu0 %v1537_v38 }
 0x862   : > { %2521 = vmatprep.subr.mxu0 %v2773_v0 }
 0x863   : > { %2522 = vmatpush3.msra.mxu0 %v1536_v39 }
 0x864   : > { %2523 = vmatprep.subr.mxu0 %v2773_v0 }
 0x865   : > { %2524 = vmatpush3.msra.mxu0 %v1535_v40 }
 0x866   : > { %2525 = vmatprep.subr.mxu0 %v2773_v0 }
 0x867   : > { %2526 = vmatpush3.msra.mxu0 %v1534_v41 }
 0x868   : > { %2527 = vmatprep.subr.mxu0 %v2773_v0 }
 0x869   : > { %2528 = vmatpush3.msra.mxu0 %v1533_v42 }
 0x86a   : > { %2529 = vmatprep.subr.mxu0 %v2773_v0 }
 0x86b   : > { %2530 = vmatpush3.msra.mxu0 %v1532_v44 }
 0x86c   : > { %2531 = vmatprep.subr.mxu0 %v2773_v0 }
 0x86d   : > { %2532 = vmatpush3.msra.mxu0 %v1531_v45 }
 0x86e   : > { %2533 = vmatprep.subr.mxu0 %v2773_v0 }
 0x86f   : > { %2534 = vmatpush3.msra.mxu0 %v1530_v46 }
 0x870   : > { %2535 = vmatprep.subr.mxu0 %v2773_v0 }
 0x871   : > { %2536 = vmatpush3.msra.mxu0 %v1529_v47 }
 0x872   : > { %2537 = vmatprep.subr.mxu0 %v2773_v0 }
 0x873   : > { %2538 = vmatpush3.msra.mxu0 %v1528_v53 }
 0x874   : > { %2539 = vmatprep.subr.mxu0 %v2773_v0 }
 0x875   : > { %2540 = vmatpush3.msra.mxu0 %v1527_v54 }
 0x876   : > { %2541 = vmatprep.subr.mxu0 %v2773_v0 }
 0x877   : > { %2542 = vmatpush3.msra.mxu0 %v1526_v55 }
 0x918   : > { %v1429_v49 = vpop.f32.mrf.mxu0 }
 0x919   : > { %v1430_v50 = vadd.f32 %v1759_v48, %v1429_v49 }
 0x91a   : > { %v2475_v51 = vpop.f32.mrf.mxu0 }
 0x91b   : > { %v1433_v52 = vmax.f32 %v1430_v50, 0.0 }
 0x91d   : > { %2509 = vmatmul.mubr.f32.vlgmr.msra.gmra.mxu1 %v1433_v52 }
 0x9dd   : > { %v1521_v57 = vpop.f32.mrf.mxu1 }
 0x9de   : > { %v1522_v43 = vadd.f32 %v1760_v56, %v1521_v57 }
 0x9df   : > { %v2510_v58 = vpop.f32.mrf.mxu1 }
 0x9e0   : > { %v1525_v59 = vmax.f32 %v1522_v43, 0.0 }
 0x9e2   : > { %2544 = vmatmul.mubr.f32.vlgmr.msra.gmra.mxu0 %v1525_v59 }
 0xaa2   : > { %v1613_v61 = vpop.f32.mrf.mxu0 }
 0xaa3   : > { %v1614_v62 = vadd.f32 %v1761_v60, %v1613_v61 }
 0xaa4   : > { %v2545_v0 = vpop.f32.mrf.mxu0 }
 0xaa5   : > { %1617 = vst [vmem:[%s236_s4] sm:$0xff] %v1614_v62 }
 0xaa6   : > { %2707 = shalt.err (!%p2704_p9)
}
 0xaa7   : > { %s2708_s28 = scalar_lea.hbm %s3240_s25, 128  ;;  %s2712_s11 = scalar_lea.hbm %s3280_s3, 256 }
 0xaa8   : > { %p2709_p1 = scmp.ne.s32.totalorder %s3240_s25, %s2708_s28  ;;  %p2713_p7 = scmp.lt.s32.totalorder %s3240_s25, %s3280_s3 }
 0xaa9   : > { %p2714_p11 = scmp.lt.s32.totalorder %s2712_s11, %s2708_s28 }
 0xaaa   : > { %p2710_p4 = pnand %p2709_p1, %p3296_p12 }
 0xaab   : > { %p2715_p8 = por %p2714_p11, %p2713_p7 }
 0xaac   : > { %p2711_p6 = pneg %p2710_p4 }
 0xaae   : > { %p2716_p3 = pnand %p2715_p8, %p2711_p6 }
 0xab0   : > { %2719 = shalt.err (!%p2716_p3)
}
 0xab1   : > { %2554 = dma.vmem_to_hbm [thread:$0]  (%p3296_p12), %s1633_s10, 128, %s3240_s25, %s1619_s26  }
 0xab2 PF: > { %s1644_s23 = sand.u32 1, %s2754_s12   ;;  %p3297_p10 = scmp.ne.s32.totalorder %s3286_s19, 0 }
 0xab3   : > { %p3298_p2 = scmp.ge.s32.totalorder %s2766_s15, 2  ;;  %s1645_s27 = scalar_lea.sflag [#allocation4], %s1644_s23 }
 0xab5   : > { %p2568_p13 = pnand %p3298_p2, %p3297_p10 }
 0xab7   : > { %p2569_p0 = pneg %p2568_p13 }
 0xab9   : > { %2749 = dma.done.wait (%p2569_p0), %s1645_s27, 128  }
 0xaba   : > { %2751 = vsyncadd (%p2569_p0), %s1645_s27, 4294967168  ;;  %p19_p5 = scmp.ge.s32.totalorder %s2850_s24, 4   ;;  %s3299_s12 = smov %s2758_s13 }
 0xabb   : > { %s3300_s13 = smov %s2762_s14  ;;  %s3301_s14 = smov %s2867_s5 }
 0xabc   : > { %s3302_s15 = smov %s2850_s24  ;;  %21 = sbr.rel (!%p19_p5) target bundleno = 7 (0x7), region = 94 }
 0xac1   :  { %1650 = vsyncpa [#allocation3], 1 }
 0xac2   :  { %1652 = vsyncpa [#allocation3 + $0x1], 1 }
 0xac3   :  { %1653 = vsyncpa [#allocation6], 1 }
 0xac4   :  { %1655 = vsyncpa [#allocation6 + $0x1], 1 }
 0xac5   :  { %1656 = vsyncpa [#allocation4], 1 }
 0xac6   :  { %1658 = vsyncpa [#allocation4 + $0x1], 1 }

</bundles_post_ra>
